<compile_context>
chip_gen: v7x
topology: tpu7x:2x2x1
jax: 0.10.0
libtpu: 0.0.40
codegen_flags: <defaults>
</compile_context>

<pallas_src>
import numpy as np
from functools import partial

import jax
import jax.numpy as jnp
from jax.experimental import pallas as pl
from jax.experimental.pallas import tpu as pltpu

NEG_SLOPE = 0.2
H_IN = W_IN = 16
FRAME = 112        # lanes per image: 100-lane padded 10x10 grid + 12-lane gap
MARGIN = 128       # zero halo at both ends of the batch tile (128-aligned base)

# ConvTranspose2d(16,4,4,2,1): for output phase r = oh % 2 and mid-grid row
# offset dr = ih - m, the contributing kernel row is kh = r + 1 - 2*dr.
KH_TAB = {(0, 0): 1, (0, -1): 3, (1, 0): 2, (1, 1): 0}


def _leaky(x):
    return jnp.where(x >= 0, x, NEG_SLOPE * x)


def _head_kernel(x_ref, mask_ref, w_ref, b_ref, out_ref, xext_ref):
    f32 = jnp.float32
    bf16 = jnp.bfloat16
    act = out_ref.shape[-1]                   # B * FRAME (static)
    mask = mask_ref[...]                      # (1, act) f32: 1.0 on valid lanes

    # the scratch persists across grid steps / cores: re-zero its halo margins
    # every step (cheap, 128-aligned) so no stale data leaks into tap windows.
    xext_ref[:, pl.ds(0, MARGIN)] = jnp.zeros((16, MARGIN), bf16)
    xext_ref[:, pl.ds(MARGIN + act, MARGIN)] = jnp.zeros((16, MARGIN), bf16)

    def store_act(acc, li):
        # bias + leaky + border mask in f32, store activations as bf16
        val = mask * _leaky(acc + b_ref[:, pl.ds(li, 1)])
        xext_ref[:, pl.ds(MARGIN, act)] = val.astype(bf16)

    # ---- layer 0: Conv2d(3,16,3,s=2,p=1) -----------------------------------
    # 4 (row,col) taps, each fused over the 4 stride-2 input phases
    # (12 packed input channels; invalid phase/tap combos carry zero weights).
    acc = jnp.zeros((16, act), f32)
    for a in range(2):
        for c in range(2):
            delta = 10 * (a - 1) + (c - 1)
            xs = x_ref[0, :, pl.ds(MARGIN + delta, act)]            # (12, act)
            w = w_ref[0, :, pl.ds(12 * (2 * a + c), 12)]            # (16, 12)
            acc = acc + jnp.dot(w, xs, preferred_element_type=f32)
    store_act(acc, 0)

    # ---- layers 1-3: all share the same 9 lane shifts {-11 .. +11} ---------
    # layers 1,2: Conv2d(16,16,3,s=1,p=1); layer 3: ConvTranspose2d(16,4,4,2,1)
    # repacked so its 16 output rows are (phase*4 + out_channel).
    for li in (1, 2, 3):
        acc = jnp.zeros((16, act), f32)
        for ky in range(3):
            for kx in range(3):
                delta = 10 * (ky - 1) + (kx - 1)
                xs = xext_ref[:, pl.ds(MARGIN + delta, act)]        # (16, act)
                w = w_ref[li, :, pl.ds(16 * (3 * ky + kx), 16)]     # (16, 16)
                acc = acc + jnp.dot(w, xs, preferred_element_type=f32)
        if li < 3:
            store_act(acc, li)
        else:
            out_ref[0, :, :] = acc + b_ref[:, pl.ds(3, 1)]          # dense 16-row store


def init_params(key):
    """Kaiming-normal (mode='fan_out', leaky_relu, a=0) weights, zero biases —
    deterministic stand-in for TensorRTOptimizedHead._initialize_weights."""
    gain = float(np.sqrt(2.0))
    ks = jax.random.split(key, 4)

    def kaiming(k, shape, fan_out):
        return (gain / np.sqrt(fan_out)) * jax.random.normal(k, shape, jnp.float32)

    return dict(
        W0=kaiming(ks[0], (16, 3, 3, 3), 16 * 3 * 3),    # Conv2d  (O, I, kh, kw)
        W1=kaiming(ks[1], (16, 16, 3, 3), 16 * 3 * 3),
        W2=kaiming(ks[2], (16, 16, 3, 3), 16 * 3 * 3),
        WT=kaiming(ks[3], (16, 4, 4, 4), 16 * 4 * 4),    # ConvT   (I, O, kh, kw)
        b0=jnp.zeros((16,), jnp.float32), b1=jnp.zeros((16,), jnp.float32),
        b2=jnp.zeros((16,), jnp.float32), b3=jnp.zeros((4,), jnp.float32))


def _prep_constants(params, dtype=jnp.bfloat16):
    W0, W1, W2, WT = params["W0"], params["W1"], params["W2"], params["WT"]

    # layer 0: (16, 48) = 4 (row,col) taps x (4 phases x 3 channels), padded to 144
    w0_cols = []
    for a in range(2):
        for c in range(2):
            blocks = []
            for p in range(2):
                for q in range(2):
                    ky, kx = 2 * a + p, 2 * c + q
                    if ky <= 2 and kx <= 2:
                        blocks.append(W0[:, :, ky, kx])              # (16, 3)
                    else:
                        blocks.append(jnp.zeros((16, 3), W0.dtype))
            w0_cols.append(jnp.concatenate(blocks, axis=1))          # (16, 12)
    w0 = jnp.pad(jnp.concatenate(w0_cols, axis=1), ((0, 0), (0, 96)))  # (16, 144)

    def cat9(W):   # 3x3 conv -> (16, 144), tap t = 3*ky + kx
        return jnp.concatenate(
            [W[:, :, ky, kx] for ky in range(3) for kx in range(3)], axis=1)

    # layer 3 (ConvTranspose2d): same 9 lane shifts; row = 4*(2r+s) + cout.
    blocks = []
    for dr in (-1, 0, 1):
        for dc in (-1, 0, 1):
            blk = jnp.zeros((16, 16), WT.dtype)
            for r in (0, 1):
                for s in (0, 1):
                    kh = KH_TAB.get((r, dr))
                    kw = KH_TAB.get((s, dc))
                    if kh is not None and kw is not None:
                        ro = 4 * (2 * r + s)
                        blk = blk.at[ro:ro + 4, :].set(WT[:, :, kh, kw].T)
            blocks.append(blk)
    w3 = jnp.concatenate(blocks, axis=1)                             # (16, 144)

    weights = jnp.stack([w0, cat9(W1), cat9(W2), w3]).astype(dtype)  # (4, 16, 144)
    bias = jnp.stack([params["b0"], params["b1"], params["b2"],
                      jnp.tile(params["b3"], 4)], axis=1)            # (16, 4) f32
    return weights, bias


@partial(jax.jit, static_argnames=("batch_tile",))
def tensorrt_head_forward(x_nchw, params, batch_tile=32):
    N = x_nchw.shape[0]
    assert x_nchw.shape[1:] == (3, H_IN, W_IN)
    B = max(1, min(batch_tile, N))          # images per grid step
    T = -(-N // B)                          # number of grid steps
    Np = T * B
    ACT = B * FRAME
    TOT = ACT + 2 * MARGIN

    x = x_nchw.astype(jnp.float32)
    if Np > N:
        x = jnp.concatenate(
            [x, jnp.zeros((Np - N, 3, H_IN, W_IN), jnp.float32)], axis=0)

    # ---- pack the 4 stride-2 input phases into a lane-major (12, lanes) slab.
    # phase (p,q) value at (u,v) sits at frame lane 10*u + v — the same 10x10
    # mid-resolution grid layout used by all later layers, so every conv tap
    # becomes a static lane shift.  Row order: 3*(2p+q) + cin.
    x_pad = jnp.pad(x, ((0, 0), (0, 0), (1, 1), (1, 1)))             # (Np,3,18,18)
    ph = x_pad.reshape(Np, 3, 9, 2, 9, 2).transpose(0, 3, 5, 1, 2, 4)  # (Np,2,2,3,9,9)
    ph = jnp.pad(ph, ((0, 0),) * 5 + ((0, 1),)).reshape(Np, 12, 90)
    ph = jnp.pad(ph, ((0, 0), (0, 0), (0, FRAME - 90)))              # (Np,12,112)
    xin = ph.reshape(T, B, 12, FRAME).transpose(0, 2, 1, 3).reshape(T, 12, ACT)
    xin = jnp.pad(xin, ((0, 0), (0, 0), (MARGIN, MARGIN)))           # (T,12,TOT)
    xin = xin.astype(jnp.bfloat16)

    # border mask: 1.0 on the 64 valid (non-ring, non-gap) lanes of each frame
    fm = np.zeros((FRAME,), np.float32)
    for gr in range(1, 9):
        for gc in range(1, 9):
            fm[10 * gr + gc] = 1.0
    mask = jnp.asarray(np.tile(fm, B)).reshape(1, ACT)

    weights, bias = _prep_constants(params)

    out = pl.pallas_call(
        _head_kernel,
        out_shape=jax.ShapeDtypeStruct((T, 16, ACT), jnp.float32),
        grid=(T,),
        in_specs=[
            pl.BlockSpec((1, 12, TOT), lambda t: (t, 0, 0)),
            pl.BlockSpec((1, ACT), lambda t: (0, 0)),
            pl.BlockSpec((4, 16, 144), lambda t: (0, 0, 0)),
            pl.BlockSpec((16, 4), lambda t: (0, 0)),
        ],
        out_specs=pl.BlockSpec((1, 16, ACT), lambda t: (t, 0, 0)),
        scratch_shapes=[pltpu.VMEM((16, TOT), jnp.bfloat16)],
        compiler_params=pltpu.CompilerParams(
            dimension_semantics=("parallel",),
            vmem_limit_bytes=48 * 1024 * 1024),
    )(xin, mask, weights, bias)                                       # (T,16,ACT)

    # ---- un-interleave the 4 output phases (pure layout plumbing) ----------
    o = out.reshape(T, 2, 2, 4, B, FRAME)[..., :100]
    o = o.reshape(T, 2, 2, 4, B, 10, 10)[..., 1:9, 1:9]               # (T,r,s,co,B,m,n)
    o = o.transpose(0, 4, 3, 5, 1, 6, 2)                              # (T,B,co,m,r,n,s)
    return o.reshape(Np, 4, 16, 16)[:N]


def reference_forward(x, params):
    """Pure-XLA reference (lax convolutions, HIGHEST precision)."""
    dn = ("NCHW", "OIHW", "NCHW")
    prec = jax.lax.Precision.HIGHEST

    def conv(v, w, b, stride, pad):
        y = jax.lax.conv_general_dilated(v, w, (stride, stride),
                                         ((pad, pad), (pad, pad)),
                                         dimension_numbers=dn, precision=prec)
        return y + b.reshape(1, -1, 1, 1)

    h = _leaky(conv(x, params["W0"], params["b0"], 2, 1))
    h = _leaky(conv(h, params["W1"], params["b1"], 1, 1))
    h = _leaky(conv(h, params["W2"], params["b2"], 1, 1))
    w_conv = jnp.flip(jnp.transpose(params["WT"], (1, 0, 2, 3)), axis=(2, 3))
    x3 = jax.lax.conv_general_dilated(h, w_conv, (1, 1), ((2, 2), (2, 2)),
                                      lhs_dilation=(2, 2),
                                      dimension_numbers=dn, precision=prec)
    return x3 + params["b3"].reshape(1, -1, 1, 1)


if __name__ == "__main__":
    key = jax.random.PRNGKey(0)
    k_x, k_x2, k_p, k_b = jax.random.split(key, 4)
    params = init_params(k_p)

    # non-zero biases so the numerical check exercises the bias path
    # (the PyTorch init zeroes biases; the forward must work for any values).
    kb = jax.random.split(k_b, 4)
    params = dict(params,
                  b0=0.1 * jax.random.normal(kb[0], (16,), jnp.float32),
                  b1=0.1 * jax.random.normal(kb[1], (16,), jnp.float32),
                  b2=0.1 * jax.random.normal(kb[2], (16,), jnp.float32),
                  b3=0.1 * jax.random.normal(kb[3], (4,), jnp.float32))

    # bf16 activation storage + single-pass bf16 MXU vs HIGHEST-precision f32
    # reference -> allow bf16-level absolute error.
    TOL = 3e-2

    # primary check: batch=2 (single grid step)
    x = jax.random.normal(k_x, (2, 3, H_IN, W_IN), jnp.float32)   # NCHW, like PyTorch
    y = jax.block_until_ready(tensorrt_head_forward(x, params))
    assert y.shape == (2, 4, 16, 16) and y.dtype == jnp.float32
    y_ref = reference_forward(x, params)
    err = float(jnp.max(jnp.abs(y - y_ref)))
    assert err < TOL, f"max abs error vs reference: {err}"

    # secondary check: batch=5 with tile=2 (multi-step grid + padded tail,
    # exercises scratch reuse across grid steps)
    x2 = jax.random.normal(k_x2, (5, 3, H_IN, W_IN), jnp.float32)
    y2 = jax.block_until_ready(tensorrt_head_forward(x2, params, batch_tile=2))
    assert y2.shape == (5, 4, 16, 16)
    err2 = float(jnp.max(jnp.abs(y2 - reference_forward(x2, params))))
    assert err2 < TOL, f"max abs error vs reference (batched): {err2}"

    print("KERNEL_OK")
</pallas_src>

<mosaic_0001>
module attributes {stable_mosaic.version = 11 : i64} {
  func.func @_head_kernel(%arg0: i32, %arg1: memref<1x12x480xbf16, #tpu.memory_space<vmem>>, %arg2: memref<1x224xf32, #tpu.memory_space<vmem>>, %arg3: memref<4x16x144xbf16, #tpu.memory_space<vmem>>, %arg4: memref<16x4xf32, #tpu.memory_space<vmem>>, %arg5: memref<1x16x224xf32, #tpu.memory_space<vmem>>, %arg6: memref<16x480xbf16, #tpu.memory_space<vmem>>) attributes {dimension_semantics = [#tpu.dimension_semantics<parallel>], iteration_bounds = array<i64: 1>, scalar_prefetch = 0 : i64, scratch_operands = 1 : i64, tpu.core_type = #tpu.core_type<tc>, window_params = [{transform_indices = @transform_0, window_bounds = array<i64: 1, 12, 480>}, {pipeline_mode = #tpu.pipeline_mode<synchronous>, transform_indices = @transform_1, window_bounds = array<i64: 1, 224>}, {pipeline_mode = #tpu.pipeline_mode<synchronous>, transform_indices = @transform_2, window_bounds = array<i64: 4, 16, 144>}, {pipeline_mode = #tpu.pipeline_mode<synchronous>, transform_indices = @transform_3, window_bounds = array<i64: 16, 4>}, {transform_indices = @transform_4, window_bounds = array<i64: 1, 16, 224>}]} {
    %c0 = arith.constant 0 : index
    %c0_0 = arith.constant 0 : index
    %0 = vector.load %arg2[%c0, %c0_0] : memref<1x224xf32, #tpu.memory_space<vmem>>, vector<1x224xf32>
    %cst = arith.constant 0.000000e+00 : bf16
    %1 = vector.broadcast %cst : bf16 to vector<16x128xbf16>
    %c0_1 = arith.constant 0 : index
    %c0_2 = arith.constant 0 : index
    %2 = vector.load %arg6[%c0_1, %c0_2] : memref<16x480xbf16, #tpu.memory_space<vmem>>, vector<16x128xbf16>
    tpu.vector_store %arg6[%c0_1, %c0_2], %1 {strides = array<i32>} : memref<16x480xbf16, #tpu.memory_space<vmem>>, vector<16x128xbf16>,
    %cst_3 = arith.constant 0.000000e+00 : bf16
    %3 = vector.broadcast %cst_3 : bf16 to vector<16x128xbf16>
    %c0_4 = arith.constant 0 : index
    %c352 = arith.constant 352 : index
    %4 = vector.load %arg6[%c0_4, %c352] : memref<16x480xbf16, #tpu.memory_space<vmem>>, vector<16x128xbf16>
    tpu.vector_store %arg6[%c0_4, %c352], %3 {strides = array<i32>} : memref<16x480xbf16, #tpu.memory_space<vmem>>, vector<16x128xbf16>,
    %cst_5 = arith.constant 0.000000e+00 : f32
    %5 = vector.broadcast %cst_5 : f32 to vector<16x224xf32>
    %c0_6 = arith.constant 0 : index
    %c0_7 = arith.constant 0 : index
    %c117 = arith.constant 117 : index
    %6 = vector.load %arg1[%c0_6, %c0_7, %c117] : memref<1x12x480xbf16, #tpu.memory_space<vmem>>, vector<1x12x224xbf16>
    %7 = vector.shape_cast %6 : vector<1x12x224xbf16> to vector<12x224xbf16>
    %c0_8 = arith.constant 0 : index
    %c0_9 = arith.constant 0 : index
    %c0_10 = arith.constant 0 : index
    %8 = vector.load %arg3[%c0_8, %c0_9, %c0_10] : memref<4x16x144xbf16, #tpu.memory_space<vmem>>, vector<1x16x12xbf16>
    %9 = vector.shape_cast %8 : vector<1x16x12xbf16> to vector<16x12xbf16>
    %cst_11 = arith.constant dense<0.000000e+00> : vector<16x224xf32>
    %10 = tpu.matmul %9, %7, %cst_11 {dimension_numbers = #tpu.dot_dimension_numbers<[1], [0], [0], [1], [0, 0, 1, 1], [], []>} : vector<16x12xbf16>, vector<12x224xbf16>, vector<16x224xf32> -> vector<16x224xf32>
    %11 = arith.addf %5, %10 : vector<16x224xf32>
    %c0_12 = arith.constant 0 : index
    %c0_13 = arith.constant 0 : index
    %c118 = arith.constant 118 : index
    %12 = vector.load %arg1[%c0_12, %c0_13, %c118] : memref<1x12x480xbf16, #tpu.memory_space<vmem>>, vector<1x12x224xbf16>
    %13 = vector.shape_cast %12 : vector<1x12x224xbf16> to vector<12x224xbf16>
    %c0_14 = arith.constant 0 : index
    %c0_15 = arith.constant 0 : index
    %c12 = arith.constant 12 : index
    %14 = vector.load %arg3[%c0_14, %c0_15, %c12] : memref<4x16x144xbf16, #tpu.memory_space<vmem>>, vector<1x16x12xbf16>
    %15 = vector.shape_cast %14 : vector<1x16x12xbf16> to vector<16x12xbf16>
    %cst_16 = arith.constant dense<0.000000e+00> : vector<16x224xf32>
    %16 = tpu.matmul %15, %13, %cst_16 {dimension_numbers = #tpu.dot_dimension_numbers<[1], [0], [0], [1], [0, 0, 1, 1], [], []>} : vector<16x12xbf16>, vector<12x224xbf16>, vector<16x224xf32> -> vector<16x224xf32>
    %17 = arith.addf %11, %16 : vector<16x224xf32>
    %c0_17 = arith.constant 0 : index
    %c0_18 = arith.constant 0 : index
    %c127 = arith.constant 127 : index
    %18 = vector.load %arg1[%c0_17, %c0_18, %c127] : memref<1x12x480xbf16, #tpu.memory_space<vmem>>, vector<1x12x224xbf16>
    %19 = vector.shape_cast %18 : vector<1x12x224xbf16> to vector<12x224xbf16>
    %c0_19 = arith.constant 0 : index
    %c0_20 = arith.constant 0 : index
    %c24 = arith.constant 24 : index
    %20 = vector.load %arg3[%c0_19, %c0_20, %c24] : memref<4x16x144xbf16, #tpu.memory_space<vmem>>, vector<1x16x12xbf16>
    %21 = vector.shape_cast %20 : vector<1x16x12xbf16> to vector<16x12xbf16>
    %cst_21 = arith.constant dense<0.000000e+00> : vector<16x224xf32>
    %22 = tpu.matmul %21, %19, %cst_21 {dimension_numbers = #tpu.dot_dimension_numbers<[1], [0], [0], [1], [0, 0, 1, 1], [], []>} : vector<16x12xbf16>, vector<12x224xbf16>, vector<16x224xf32> -> vector<16x224xf32>
    %23 = arith.addf %17, %22 : vector<16x224xf32>
    %c0_22 = arith.constant 0 : index
    %c0_23 = arith.constant 0 : index
    %c128 = arith.constant 128 : index
    %24 = vector.load %arg1[%c0_22, %c0_23, %c128] : memref<1x12x480xbf16, #tpu.memory_space<vmem>>, vector<1x12x224xbf16>
    %25 = vector.shape_cast %24 : vector<1x12x224xbf16> to vector<12x224xbf16>
    %c0_24 = arith.constant 0 : index
    %c0_25 = arith.constant 0 : index
    %c36 = arith.constant 36 : index
    %26 = vector.load %arg3[%c0_24, %c0_25, %c36] : memref<4x16x144xbf16, #tpu.memory_space<vmem>>, vector<1x16x12xbf16>
    %27 = vector.shape_cast %26 : vector<1x16x12xbf16> to vector<16x12xbf16>
    %cst_26 = arith.constant dense<0.000000e+00> : vector<16x224xf32>
    %28 = tpu.matmul %27, %25, %cst_26 {dimension_numbers = #tpu.dot_dimension_numbers<[1], [0], [0], [1], [0, 0, 1, 1], [], []>} : vector<16x12xbf16>, vector<12x224xbf16>, vector<16x224xf32> -> vector<16x224xf32>
    %29 = arith.addf %23, %28 : vector<16x224xf32>
    %c0_27 = arith.constant 0 : index
    %c0_28 = arith.constant 0 : index
    %30 = vector.load %arg4[%c0_27, %c0_28] : memref<16x4xf32, #tpu.memory_space<vmem>>, vector<16x1xf32>
    %31 = vector.broadcast %30 : vector<16x1xf32> to vector<16x224xf32>
    %32 = arith.addf %29, %31 : vector<16x224xf32>
    %cst_29 = arith.constant 0.000000e+00 : f32
    %33 = vector.broadcast %cst_29 : f32 to vector<16x224xf32>
    %34 = arith.cmpf oge, %32, %33 : vector<16x224xf32>
    %cst_30 = arith.constant 2.000000e-01 : f32
    %35 = vector.broadcast %cst_30 : f32 to vector<16x224xf32>
    %36 = arith.mulf %35, %32 : vector<16x224xf32>
    %37 = arith.select %34, %32, %36 : vector<16x224xi1>, vector<16x224xf32>
    %38 = vector.broadcast %0 : vector<1x224xf32> to vector<16x224xf32>
    %39 = arith.mulf %38, %37 : vector<16x224xf32>
    %40 = arith.truncf %39 : vector<16x224xf32> to vector<16x224xbf16>
    %c0_31 = arith.constant 0 : index
    %c128_32 = arith.constant 128 : index
    %41 = vector.load %arg6[%c0_31, %c128_32] : memref<16x480xbf16, #tpu.memory_space<vmem>>, vector<16x224xbf16>
    tpu.vector_store %arg6[%c0_31, %c128_32], %40 {strides = array<i32>} : memref<16x480xbf16, #tpu.memory_space<vmem>>, vector<16x224xbf16>,
    %cst_33 = arith.constant 0.000000e+00 : f32
    %42 = vector.broadcast %cst_33 : f32 to vector<16x224xf32>
    %c0_34 = arith.constant 0 : index
    %c117_35 = arith.constant 117 : index
    %43 = vector.load %arg6[%c0_34, %c117_35] : memref<16x480xbf16, #tpu.memory_space<vmem>>, vector<16x224xbf16>
    %c1 = arith.constant 1 : index
    %c0_36 = arith.constant 0 : index
    %c0_37 = arith.constant 0 : index
    %44 = vector.load %arg3[%c1, %c0_36, %c0_37] : memref<4x16x144xbf16, #tpu.memory_space<vmem>>, vector<1x16x16xbf16>
    %45 = vector.shape_cast %44 : vector<1x16x16xbf16> to vector<16x16xbf16>
    %cst_38 = arith.constant dense<0.000000e+00> : vector<16x224xf32>
    %46 = tpu.matmul %45, %43, %cst_38 {dimension_numbers = #tpu.dot_dimension_numbers<[1], [0], [0], [1], [0, 0, 1, 1], [], []>} : vector<16x16xbf16>, vector<16x224xbf16>, vector<16x224xf32> -> vector<16x224xf32>
    %47 = arith.addf %42, %46 : vector<16x224xf32>
    %c0_39 = arith.constant 0 : index
    %c118_40 = arith.constant 118 : index
    %48 = vector.load %arg6[%c0_39, %c118_40] : memref<16x480xbf16, #tpu.memory_space<vmem>>, vector<16x224xbf16>
    %c1_41 = arith.constant 1 : index
    %c0_42 = arith.constant 0 : index
    %c16 = arith.constant 16 : index
    %49 = vector.load %arg3[%c1_41, %c0_42, %c16] : memref<4x16x144xbf16, #tpu.memory_space<vmem>>, vector<1x16x16xbf16>
    %50 = vector.shape_cast %49 : vector<1x16x16xbf16> to vector<16x16xbf16>
    %cst_43 = arith.constant dense<0.000000e+00> : vector<16x224xf32>
    %51 = tpu.matmul %50, %48, %cst_43 {dimension_numbers = #tpu.dot_dimension_numbers<[1], [0], [0], [1], [0, 0, 1, 1], [], []>} : vector<16x16xbf16>, vector<16x224xbf16>, vector<16x224xf32> -> vector<16x224xf32>
    %52 = arith.addf %47, %51 : vector<16x224xf32>
    %c0_44 = arith.constant 0 : index
    %c119 = arith.constant 119 : index
    %53 = vector.load %arg6[%c0_44, %c119] : memref<16x480xbf16, #tpu.memory_space<vmem>>, vector<16x224xbf16>
    %c1_45 = arith.constant 1 : index
    %c0_46 = arith.constant 0 : index
    %c32 = arith.constant 32 : index
    %54 = vector.load %arg3[%c1_45, %c0_46, %c32] : memref<4x16x144xbf16, #tpu.memory_space<vmem>>, vector<1x16x16xbf16>
    %55 = vector.shape_cast %54 : vector<1x16x16xbf16> to vector<16x16xbf16>
    %cst_47 = arith.constant dense<0.000000e+00> : vector<16x224xf32>
    %56 = tpu.matmul %55, %53, %cst_47 {dimension_numbers = #tpu.dot_dimension_numbers<[1], [0], [0], [1], [0, 0, 1, 1], [], []>} : vector<16x16xbf16>, vector<16x224xbf16>, vector<16x224xf32> -> vector<16x224xf32>
    %57 = arith.addf %52, %56 : vector<16x224xf32>
    %c0_48 = arith.constant 0 : index
    %c127_49 = arith.constant 127 : index
    %58 = vector.load %arg6[%c0_48, %c127_49] : memref<16x480xbf16, #tpu.memory_space<vmem>>, vector<16x224xbf16>
    %c1_50 = arith.constant 1 : index
    %c0_51 = arith.constant 0 : index
    %c48 = arith.constant 48 : index
    %59 = vector.load %arg3[%c1_50, %c0_51, %c48] : memref<4x16x144xbf16, #tpu.memory_space<vmem>>, vector<1x16x16xbf16>
    %60 = vector.shape_cast %59 : vector<1x16x16xbf16> to vector<16x16xbf16>
    %cst_52 = arith.constant dense<0.000000e+00> : vector<16x224xf32>
    %61 = tpu.matmul %60, %58, %cst_52 {dimension_numbers = #tpu.dot_dimension_numbers<[1], [0], [0], [1], [0, 0, 1, 1], [], []>} : vector<16x16xbf16>, vector<16x224xbf16>, vector<16x224xf32> -> vector<16x224xf32>
    %62 = arith.addf %57, %61 : vector<16x224xf32>
    %c0_53 = arith.constant 0 : index
    %c128_54 = arith.constant 128 : index
    %63 = vector.load %arg6[%c0_53, %c128_54] : memref<16x480xbf16, #tpu.memory_space<vmem>>, vector<16x224xbf16>
    %c1_55 = arith.constant 1 : index
    %c0_56 = arith.constant 0 : index
    %c64 = arith.constant 64 : index
    %64 = vector.load %arg3[%c1_55, %c0_56, %c64] : memref<4x16x144xbf16, #tpu.memory_space<vmem>>, vector<1x16x16xbf16>
    %65 = vector.shape_cast %64 : vector<1x16x16xbf16> to vector<16x16xbf16>
    %cst_57 = arith.constant dense<0.000000e+00> : vector<16x224xf32>
    %66 = tpu.matmul %65, %63, %cst_57 {dimension_numbers = #tpu.dot_dimension_numbers<[1], [0], [0], [1], [0, 0, 1, 1], [], []>} : vector<16x16xbf16>, vector<16x224xbf16>, vector<16x224xf32> -> vector<16x224xf32>
    %67 = arith.addf %62, %66 : vector<16x224xf32>
    %c0_58 = arith.constant 0 : index
    %c129 = arith.constant 129 : index
    %68 = vector.load %arg6[%c0_58, %c129] : memref<16x480xbf16, #tpu.memory_space<vmem>>, vector<16x224xbf16>
    %c1_59 = arith.constant 1 : index
    %c0_60 = arith.constant 0 : index
    %c80 = arith.constant 80 : index
    %69 = vector.load %arg3[%c1_59, %c0_60, %c80] : memref<4x16x144xbf16, #tpu.memory_space<vmem>>, vector<1x16x16xbf16>
    %70 = vector.shape_cast %69 : vector<1x16x16xbf16> to vector<16x16xbf16>
    %cst_61 = arith.constant dense<0.000000e+00> : vector<16x224xf32>
    %71 = tpu.matmul %70, %68, %cst_61 {dimension_numbers = #tpu.dot_dimension_numbers<[1], [0], [0], [1], [0, 0, 1, 1], [], []>} : vector<16x16xbf16>, vector<16x224xbf16>, vector<16x224xf32> -> vector<16x224xf32>
    %72 = arith.addf %67, %71 : vector<16x224xf32>
    %c0_62 = arith.constant 0 : index
    %c137 = arith.constant 137 : index
    %73 = vector.load %arg6[%c0_62, %c137] : memref<16x480xbf16, #tpu.memory_space<vmem>>, vector<16x224xbf16>
    %c1_63 = arith.constant 1 : index
    %c0_64 = arith.constant 0 : index
    %c96 = arith.constant 96 : index
    %74 = vector.load %arg3[%c1_63, %c0_64, %c96] : memref<4x16x144xbf16, #tpu.memory_space<vmem>>, vector<1x16x16xbf16>
    %75 = vector.shape_cast %74 : vector<1x16x16xbf16> to vector<16x16xbf16>
    %cst_65 = arith.constant dense<0.000000e+00> : vector<16x224xf32>
    %76 = tpu.matmul %75, %73, %cst_65 {dimension_numbers = #tpu.dot_dimension_numbers<[1], [0], [0], [1], [0, 0, 1, 1], [], []>} : vector<16x16xbf16>, vector<16x224xbf16>, vector<16x224xf32> -> vector<16x224xf32>
    %77 = arith.addf %72, %76 : vector<16x224xf32>
    %c0_66 = arith.constant 0 : index
    %c138 = arith.constant 138 : index
    %78 = vector.load %arg6[%c0_66, %c138] : memref<16x480xbf16, #tpu.memory_space<vmem>>, vector<16x224xbf16>
    %c1_67 = arith.constant 1 : index
    %c0_68 = arith.constant 0 : index
    %c112 = arith.constant 112 : index
    %79 = vector.load %arg3[%c1_67, %c0_68, %c112] : memref<4x16x144xbf16, #tpu.memory_space<vmem>>, vector<1x16x16xbf16>
    %80 = vector.shape_cast %79 : vector<1x16x16xbf16> to vector<16x16xbf16>
    %cst_69 = arith.constant dense<0.000000e+00> : vector<16x224xf32>
    %81 = tpu.matmul %80, %78, %cst_69 {dimension_numbers = #tpu.dot_dimension_numbers<[1], [0], [0], [1], [0, 0, 1, 1], [], []>} : vector<16x16xbf16>, vector<16x224xbf16>, vector<16x224xf32> -> vector<16x224xf32>
    %82 = arith.addf %77, %81 : vector<16x224xf32>
    %c0_70 = arith.constant 0 : index
    %c139 = arith.constant 139 : index
    %83 = vector.load %arg6[%c0_70, %c139] : memref<16x480xbf16, #tpu.memory_space<vmem>>, vector<16x224xbf16>
    %c1_71 = arith.constant 1 : index
    %c0_72 = arith.constant 0 : index
    %c128_73 = arith.constant 128 : index
    %84 = vector.load %arg3[%c1_71, %c0_72, %c128_73] : memref<4x16x144xbf16, #tpu.memory_space<vmem>>, vector<1x16x16xbf16>
    %85 = vector.shape_cast %84 : vector<1x16x16xbf16> to vector<16x16xbf16>
    %cst_74 = arith.constant dense<0.000000e+00> : vector<16x224xf32>
    %86 = tpu.matmul %85, %83, %cst_74 {dimension_numbers = #tpu.dot_dimension_numbers<[1], [0], [0], [1], [0, 0, 1, 1], [], []>} : vector<16x16xbf16>, vector<16x224xbf16>, vector<16x224xf32> -> vector<16x224xf32>
    %87 = arith.addf %82, %86 : vector<16x224xf32>
    %c0_75 = arith.constant 0 : index
    %c1_76 = arith.constant 1 : index
    %88 = vector.load %arg4[%c0_75, %c1_76] : memref<16x4xf32, #tpu.memory_space<vmem>>, vector<16x1xf32>
    %89 = vector.broadcast %88 : vector<16x1xf32> to vector<16x224xf32>
    %90 = arith.addf %87, %89 : vector<16x224xf32>
    %cst_77 = arith.constant 0.000000e+00 : f32
    %91 = vector.broadcast %cst_77 : f32 to vector<16x224xf32>
    %92 = arith.cmpf oge, %90, %91 : vector<16x224xf32>
    %cst_78 = arith.constant 2.000000e-01 : f32
    %93 = vector.broadcast %cst_78 : f32 to vector<16x224xf32>
    %94 = arith.mulf %93, %90 : vector<16x224xf32>
    %95 = arith.select %92, %90, %94 : vector<16x224xi1>, vector<16x224xf32>
    %96 = vector.broadcast %0 : vector<1x224xf32> to vector<16x224xf32>
    %97 = arith.mulf %96, %95 : vector<16x224xf32>
    %98 = arith.truncf %97 : vector<16x224xf32> to vector<16x224xbf16>
    %c0_79 = arith.constant 0 : index
    %c128_80 = arith.constant 128 : index
    %99 = vector.load %arg6[%c0_79, %c128_80] : memref<16x480xbf16, #tpu.memory_space<vmem>>, vector<16x224xbf16>
    tpu.vector_store %arg6[%c0_79, %c128_80], %98 {strides = array<i32>} : memref<16x480xbf16, #tpu.memory_space<vmem>>, vector<16x224xbf16>,
    %cst_81 = arith.constant 0.000000e+00 : f32
    %100 = vector.broadcast %cst_81 : f32 to vector<16x224xf32>
    %c0_82 = arith.constant 0 : index
    %c117_83 = arith.constant 117 : index
    %101 = vector.load %arg6[%c0_82, %c117_83] : memref<16x480xbf16, #tpu.memory_space<vmem>>, vector<16x224xbf16>
    %c2 = arith.constant 2 : index
    %c0_84 = arith.constant 0 : index
    %c0_85 = arith.constant 0 : index
    %102 = vector.load %arg3[%c2, %c0_84, %c0_85] : memref<4x16x144xbf16, #tpu.memory_space<vmem>>, vector<1x16x16xbf16>
    %103 = vector.shape_cast %102 : vector<1x16x16xbf16> to vector<16x16xbf16>
    %cst_86 = arith.constant dense<0.000000e+00> : vector<16x224xf32>
    %104 = tpu.matmul %103, %101, %cst_86 {dimension_numbers = #tpu.dot_dimension_numbers<[1], [0], [0], [1], [0, 0, 1, 1], [], []>} : vector<16x16xbf16>, vector<16x224xbf16>, vector<16x224xf32> -> vector<16x224xf32>
    %105 = arith.addf %100, %104 : vector<16x224xf32>
    %c0_87 = arith.constant 0 : index
    %c118_88 = arith.constant 118 : index
    %106 = vector.load %arg6[%c0_87, %c118_88] : memref<16x480xbf16, #tpu.memory_space<vmem>>, vector<16x224xbf16>
    %c2_89 = arith.constant 2 : index
    %c0_90 = arith.constant 0 : index
    %c16_91 = arith.constant 16 : index
    %107 = vector.load %arg3[%c2_89, %c0_90, %c16_91] : memref<4x16x144xbf16, #tpu.memory_space<vmem>>, vector<1x16x16xbf16>
    %108 = vector.shape_cast %107 : vector<1x16x16xbf16> to vector<16x16xbf16>
    %cst_92 = arith.constant dense<0.000000e+00> : vector<16x224xf32>
    %109 = tpu.matmul %108, %106, %cst_92 {dimension_numbers = #tpu.dot_dimension_numbers<[1], [0], [0], [1], [0, 0, 1, 1], [], []>} : vector<16x16xbf16>, vector<16x224xbf16>, vector<16x224xf32> -> vector<16x224xf32>
    %110 = arith.addf %105, %109 : vector<16x224xf32>
    %c0_93 = arith.constant 0 : index
    %c119_94 = arith.constant 119 : index
    %111 = vector.load %arg6[%c0_93, %c119_94] : memref<16x480xbf16, #tpu.memory_space<vmem>>, vector<16x224xbf16>
    %c2_95 = arith.constant 2 : index
    %c0_96 = arith.constant 0 : index
    %c32_97 = arith.constant 32 : index
    %112 = vector.load %arg3[%c2_95, %c0_96, %c32_97] : memref<4x16x144xbf16, #tpu.memory_space<vmem>>, vector<1x16x16xbf16>
    %113 = vector.shape_cast %112 : vector<1x16x16xbf16> to vector<16x16xbf16>
    %cst_98 = arith.constant dense<0.000000e+00> : vector<16x224xf32>
    %114 = tpu.matmul %113, %111, %cst_98 {dimension_numbers = #tpu.dot_dimension_numbers<[1], [0], [0], [1], [0, 0, 1, 1], [], []>} : vector<16x16xbf16>, vector<16x224xbf16>, vector<16x224xf32> -> vector<16x224xf32>
    %115 = arith.addf %110, %114 : vector<16x224xf32>
    %c0_99 = arith.constant 0 : index
    %c127_100 = arith.constant 127 : index
    %116 = vector.load %arg6[%c0_99, %c127_100] : memref<16x480xbf16, #tpu.memory_space<vmem>>, vector<16x224xbf16>
    %c2_101 = arith.constant 2 : index
    %c0_102 = arith.constant 0 : index
    %c48_103 = arith.constant 48 : index
    %117 = vector.load %arg3[%c2_101, %c0_102, %c48_103] : memref<4x16x144xbf16, #tpu.memory_space<vmem>>, vector<1x16x16xbf16>
    %118 = vector.shape_cast %117 : vector<1x16x16xbf16> to vector<16x16xbf16>
    %cst_104 = arith.constant dense<0.000000e+00> : vector<16x224xf32>
    %119 = tpu.matmul %118, %116, %cst_104 {dimension_numbers = #tpu.dot_dimension_numbers<[1], [0], [0], [1], [0, 0, 1, 1], [], []>} : vector<16x16xbf16>, vector<16x224xbf16>, vector<16x224xf32> -> vector<16x224xf32>
    %120 = arith.addf %115, %119 : vector<16x224xf32>
    %c0_105 = arith.constant 0 : index
    %c128_106 = arith.constant 128 : index
    %121 = vector.load %arg6[%c0_105, %c128_106] : memref<16x480xbf16, #tpu.memory_space<vmem>>, vector<16x224xbf16>
    %c2_107 = arith.constant 2 : index
    %c0_108 = arith.constant 0 : index
    %c64_109 = arith.constant 64 : index
    %122 = vector.load %arg3[%c2_107, %c0_108, %c64_109] : memref<4x16x144xbf16, #tpu.memory_space<vmem>>, vector<1x16x16xbf16>
    %123 = vector.shape_cast %122 : vector<1x16x16xbf16> to vector<16x16xbf16>
    %cst_110 = arith.constant dense<0.000000e+00> : vector<16x224xf32>
    %124 = tpu.matmul %123, %121, %cst_110 {dimension_numbers = #tpu.dot_dimension_numbers<[1], [0], [0], [1], [0, 0, 1, 1], [], []>} : vector<16x16xbf16>, vector<16x224xbf16>, vector<16x224xf32> -> vector<16x224xf32>
    %125 = arith.addf %120, %124 : vector<16x224xf32>
    %c0_111 = arith.constant 0 : index
    %c129_112 = arith.constant 129 : index
    %126 = vector.load %arg6[%c0_111, %c129_112] : memref<16x480xbf16, #tpu.memory_space<vmem>>, vector<16x224xbf16>
    %c2_113 = arith.constant 2 : index
    %c0_114 = arith.constant 0 : index
    %c80_115 = arith.constant 80 : index
    %127 = vector.load %arg3[%c2_113, %c0_114, %c80_115] : memref<4x16x144xbf16, #tpu.memory_space<vmem>>, vector<1x16x16xbf16>
    %128 = vector.shape_cast %127 : vector<1x16x16xbf16> to vector<16x16xbf16>
    %cst_116 = arith.constant dense<0.000000e+00> : vector<16x224xf32>
    %129 = tpu.matmul %128, %126, %cst_116 {dimension_numbers = #tpu.dot_dimension_numbers<[1], [0], [0], [1], [0, 0, 1, 1], [], []>} : vector<16x16xbf16>, vector<16x224xbf16>, vector<16x224xf32> -> vector<16x224xf32>
    %130 = arith.addf %125, %129 : vector<16x224xf32>
    %c0_117 = arith.constant 0 : index
    %c137_118 = arith.constant 137 : index
    %131 = vector.load %arg6[%c0_117, %c137_118] : memref<16x480xbf16, #tpu.memory_space<vmem>>, vector<16x224xbf16>
    %c2_119 = arith.constant 2 : index
    %c0_120 = arith.constant 0 : index
    %c96_121 = arith.constant 96 : index
    %132 = vector.load %arg3[%c2_119, %c0_120, %c96_121] : memref<4x16x144xbf16, #tpu.memory_space<vmem>>, vector<1x16x16xbf16>
    %133 = vector.shape_cast %132 : vector<1x16x16xbf16> to vector<16x16xbf16>
    %cst_122 = arith.constant dense<0.000000e+00> : vector<16x224xf32>
    %134 = tpu.matmul %133, %131, %cst_122 {dimension_numbers = #tpu.dot_dimension_numbers<[1], [0], [0], [1], [0, 0, 1, 1], [], []>} : vector<16x16xbf16>, vector<16x224xbf16>, vector<16x224xf32> -> vector<16x224xf32>
    %135 = arith.addf %130, %134 : vector<16x224xf32>
    %c0_123 = arith.constant 0 : index
    %c138_124 = arith.constant 138 : index
    %136 = vector.load %arg6[%c0_123, %c138_124] : memref<16x480xbf16, #tpu.memory_space<vmem>>, vector<16x224xbf16>
    %c2_125 = arith.constant 2 : index
    %c0_126 = arith.constant 0 : index
    %c112_127 = arith.constant 112 : index
    %137 = vector.load %arg3[%c2_125, %c0_126, %c112_127] : memref<4x16x144xbf16, #tpu.memory_space<vmem>>, vector<1x16x16xbf16>
    %138 = vector.shape_cast %137 : vector<1x16x16xbf16> to vector<16x16xbf16>
    %cst_128 = arith.constant dense<0.000000e+00> : vector<16x224xf32>
    %139 = tpu.matmul %138, %136, %cst_128 {dimension_numbers = #tpu.dot_dimension_numbers<[1], [0], [0], [1], [0, 0, 1, 1], [], []>} : vector<16x16xbf16>, vector<16x224xbf16>, vector<16x224xf32> -> vector<16x224xf32>
    %140 = arith.addf %135, %139 : vector<16x224xf32>
    %c0_129 = arith.constant 0 : index
    %c139_130 = arith.constant 139 : index
    %141 = vector.load %arg6[%c0_129, %c139_130] : memref<16x480xbf16, #tpu.memory_space<vmem>>, vector<16x224xbf16>
    %c2_131 = arith.constant 2 : index
    %c0_132 = arith.constant 0 : index
    %c128_133 = arith.constant 128 : index
    %142 = vector.load %arg3[%c2_131, %c0_132, %c128_133] : memref<4x16x144xbf16, #tpu.memory_space<vmem>>, vector<1x16x16xbf16>
    %143 = vector.shape_cast %142 : vector<1x16x16xbf16> to vector<16x16xbf16>
    %cst_134 = arith.constant dense<0.000000e+00> : vector<16x224xf32>
    %144 = tpu.matmul %143, %141, %cst_134 {dimension_numbers = #tpu.dot_dimension_numbers<[1], [0], [0], [1], [0, 0, 1, 1], [], []>} : vector<16x16xbf16>, vector<16x224xbf16>, vector<16x224xf32> -> vector<16x224xf32>
    %145 = arith.addf %140, %144 : vector<16x224xf32>
    %c0_135 = arith.constant 0 : index
    %c2_136 = arith.constant 2 : index
    %146 = vector.load %arg4[%c0_135, %c2_136] : memref<16x4xf32, #tpu.memory_space<vmem>>, vector<16x1xf32>
    %147 = vector.broadcast %146 : vector<16x1xf32> to vector<16x224xf32>
    %148 = arith.addf %145, %147 : vector<16x224xf32>
    %cst_137 = arith.constant 0.000000e+00 : f32
    %149 = vector.broadcast %cst_137 : f32 to vector<16x224xf32>
    %150 = arith.cmpf oge, %148, %149 : vector<16x224xf32>
    %cst_138 = arith.constant 2.000000e-01 : f32
    %151 = vector.broadcast %cst_138 : f32 to vector<16x224xf32>
    %152 = arith.mulf %151, %148 : vector<16x224xf32>
    %153 = arith.select %150, %148, %152 : vector<16x224xi1>, vector<16x224xf32>
    %154 = vector.broadcast %0 : vector<1x224xf32> to vector<16x224xf32>
    %155 = arith.mulf %154, %153 : vector<16x224xf32>
    %156 = arith.truncf %155 : vector<16x224xf32> to vector<16x224xbf16>
    %c0_139 = arith.constant 0 : index
    %c128_140 = arith.constant 128 : index
    %157 = vector.load %arg6[%c0_139, %c128_140] : memref<16x480xbf16, #tpu.memory_space<vmem>>, vector<16x224xbf16>
    tpu.vector_store %arg6[%c0_139, %c128_140], %156 {strides = array<i32>} : memref<16x480xbf16, #tpu.memory_space<vmem>>, vector<16x224xbf16>,
    %cst_141 = arith.constant 0.000000e+00 : f32
    %158 = vector.broadcast %cst_141 : f32 to vector<16x224xf32>
    %c0_142 = arith.constant 0 : index
    %c117_143 = arith.constant 117 : index
    %159 = vector.load %arg6[%c0_142, %c117_143] : memref<16x480xbf16, #tpu.memory_space<vmem>>, vector<16x224xbf16>
    %c3 = arith.constant 3 : index
    %c0_144 = arith.constant 0 : index
    %c0_145 = arith.constant 0 : index
    %160 = vector.load %arg3[%c3, %c0_144, %c0_145] : memref<4x16x144xbf16, #tpu.memory_space<vmem>>, vector<1x16x16xbf16>
    %161 = vector.shape_cast %160 : vector<1x16x16xbf16> to vector<16x16xbf16>
    %cst_146 = arith.constant dense<0.000000e+00> : vector<16x224xf32>
    %162 = tpu.matmul %161, %159, %cst_146 {dimension_numbers = #tpu.dot_dimension_numbers<[1], [0], [0], [1], [0, 0, 1, 1], [], []>} : vector<16x16xbf16>, vector<16x224xbf16>, vector<16x224xf32> -> vector<16x224xf32>
    %163 = arith.addf %158, %162 : vector<16x224xf32>
    %c0_147 = arith.constant 0 : index
    %c118_148 = arith.constant 118 : index
    %164 = vector.load %arg6[%c0_147, %c118_148] : memref<16x480xbf16, #tpu.memory_space<vmem>>, vector<16x224xbf16>
    %c3_149 = arith.constant 3 : index
    %c0_150 = arith.constant 0 : index
    %c16_151 = arith.constant 16 : index
    %165 = vector.load %arg3[%c3_149, %c0_150, %c16_151] : memref<4x16x144xbf16, #tpu.memory_space<vmem>>, vector<1x16x16xbf16>
    %166 = vector.shape_cast %165 : vector<1x16x16xbf16> to vector<16x16xbf16>
    %cst_152 = arith.constant dense<0.000000e+00> : vector<16x224xf32>
    %167 = tpu.matmul %166, %164, %cst_152 {dimension_numbers = #tpu.dot_dimension_numbers<[1], [0], [0], [1], [0, 0, 1, 1], [], []>} : vector<16x16xbf16>, vector<16x224xbf16>, vector<16x224xf32> -> vector<16x224xf32>
    %168 = arith.addf %163, %167 : vector<16x224xf32>
    %c0_153 = arith.constant 0 : index
    %c119_154 = arith.constant 119 : index
    %169 = vector.load %arg6[%c0_153, %c119_154] : memref<16x480xbf16, #tpu.memory_space<vmem>>, vector<16x224xbf16>
    %c3_155 = arith.constant 3 : index
    %c0_156 = arith.constant 0 : index
    %c32_157 = arith.constant 32 : index
    %170 = vector.load %arg3[%c3_155, %c0_156, %c32_157] : memref<4x16x144xbf16, #tpu.memory_space<vmem>>, vector<1x16x16xbf16>
    %171 = vector.shape_cast %170 : vector<1x16x16xbf16> to vector<16x16xbf16>
    %cst_158 = arith.constant dense<0.000000e+00> : vector<16x224xf32>
    %172 = tpu.matmul %171, %169, %cst_158 {dimension_numbers = #tpu.dot_dimension_numbers<[1], [0], [0], [1], [0, 0, 1, 1], [], []>} : vector<16x16xbf16>, vector<16x224xbf16>, vector<16x224xf32> -> vector<16x224xf32>
    %173 = arith.addf %168, %172 : vector<16x224xf32>
    %c0_159 = arith.constant 0 : index
    %c127_160 = arith.constant 127 : index
    %174 = vector.load %arg6[%c0_159, %c127_160] : memref<16x480xbf16, #tpu.memory_space<vmem>>, vector<16x224xbf16>
    %c3_161 = arith.constant 3 : index
    %c0_162 = arith.constant 0 : index
    %c48_163 = arith.constant 48 : index
    %175 = vector.load %arg3[%c3_161, %c0_162, %c48_163] : memref<4x16x144xbf16, #tpu.memory_space<vmem>>, vector<1x16x16xbf16>
    %176 = vector.shape_cast %175 : vector<1x16x16xbf16> to vector<16x16xbf16>
    %cst_164 = arith.constant dense<0.000000e+00> : vector<16x224xf32>
    %177 = tpu.matmul %176, %174, %cst_164 {dimension_numbers = #tpu.dot_dimension_numbers<[1], [0], [0], [1], [0, 0, 1, 1], [], []>} : vector<16x16xbf16>, vector<16x224xbf16>, vector<16x224xf32> -> vector<16x224xf32>
    %178 = arith.addf %173, %177 : vector<16x224xf32>
    %c0_165 = arith.constant 0 : index
    %c128_166 = arith.constant 128 : index
    %179 = vector.load %arg6[%c0_165, %c128_166] : memref<16x480xbf16, #tpu.memory_space<vmem>>, vector<16x224xbf16>
    %c3_167 = arith.constant 3 : index
    %c0_168 = arith.constant 0 : index
    %c64_169 = arith.constant 64 : index
    %180 = vector.load %arg3[%c3_167, %c0_168, %c64_169] : memref<4x16x144xbf16, #tpu.memory_space<vmem>>, vector<1x16x16xbf16>
    %181 = vector.shape_cast %180 : vector<1x16x16xbf16> to vector<16x16xbf16>
    %cst_170 = arith.constant dense<0.000000e+00> : vector<16x224xf32>
    %182 = tpu.matmul %181, %179, %cst_170 {dimension_numbers = #tpu.dot_dimension_numbers<[1], [0], [0], [1], [0, 0, 1, 1], [], []>} : vector<16x16xbf16>, vector<16x224xbf16>, vector<16x224xf32> -> vector<16x224xf32>
    %183 = arith.addf %178, %182 : vector<16x224xf32>
    %c0_171 = arith.constant 0 : index
    %c129_172 = arith.constant 129 : index
    %184 = vector.load %arg6[%c0_171, %c129_172] : memref<16x480xbf16, #tpu.memory_space<vmem>>, vector<16x224xbf16>
    %c3_173 = arith.constant 3 : index
    %c0_174 = arith.constant 0 : index
    %c80_175 = arith.constant 80 : index
    %185 = vector.load %arg3[%c3_173, %c0_174, %c80_175] : memref<4x16x144xbf16, #tpu.memory_space<vmem>>, vector<1x16x16xbf16>
    %186 = vector.shape_cast %185 : vector<1x16x16xbf16> to vector<16x16xbf16>
    %cst_176 = arith.constant dense<0.000000e+00> : vector<16x224xf32>
    %187 = tpu.matmul %186, %184, %cst_176 {dimension_numbers = #tpu.dot_dimension_numbers<[1], [0], [0], [1], [0, 0, 1, 1], [], []>} : vector<16x16xbf16>, vector<16x224xbf16>, vector<16x224xf32> -> vector<16x224xf32>
    %188 = arith.addf %183, %187 : vector<16x224xf32>
    %c0_177 = arith.constant 0 : index
    %c137_178 = arith.constant 137 : index
    %189 = vector.load %arg6[%c0_177, %c137_178] : memref<16x480xbf16, #tpu.memory_space<vmem>>, vector<16x224xbf16>
    %c3_179 = arith.constant 3 : index
    %c0_180 = arith.constant 0 : index
    %c96_181 = arith.constant 96 : index
    %190 = vector.load %arg3[%c3_179, %c0_180, %c96_181] : memref<4x16x144xbf16, #tpu.memory_space<vmem>>, vector<1x16x16xbf16>
    %191 = vector.shape_cast %190 : vector<1x16x16xbf16> to vector<16x16xbf16>
    %cst_182 = arith.constant dense<0.000000e+00> : vector<16x224xf32>
    %192 = tpu.matmul %191, %189, %cst_182 {dimension_numbers = #tpu.dot_dimension_numbers<[1], [0], [0], [1], [0, 0, 1, 1], [], []>} : vector<16x16xbf16>, vector<16x224xbf16>, vector<16x224xf32> -> vector<16x224xf32>
    %193 = arith.addf %188, %192 : vector<16x224xf32>
    %c0_183 = arith.constant 0 : index
    %c138_184 = arith.constant 138 : index
    %194 = vector.load %arg6[%c0_183, %c138_184] : memref<16x480xbf16, #tpu.memory_space<vmem>>, vector<16x224xbf16>
    %c3_185 = arith.constant 3 : index
    %c0_186 = arith.constant 0 : index
    %c112_187 = arith.constant 112 : index
    %195 = vector.load %arg3[%c3_185, %c0_186, %c112_187] : memref<4x16x144xbf16, #tpu.memory_space<vmem>>, vector<1x16x16xbf16>
    %196 = vector.shape_cast %195 : vector<1x16x16xbf16> to vector<16x16xbf16>
    %cst_188 = arith.constant dense<0.000000e+00> : vector<16x224xf32>
    %197 = tpu.matmul %196, %194, %cst_188 {dimension_numbers = #tpu.dot_dimension_numbers<[1], [0], [0], [1], [0, 0, 1, 1], [], []>} : vector<16x16xbf16>, vector<16x224xbf16>, vector<16x224xf32> -> vector<16x224xf32>
    %198 = arith.addf %193, %197 : vector<16x224xf32>
    %c0_189 = arith.constant 0 : index
    %c139_190 = arith.constant 139 : index
    %199 = vector.load %arg6[%c0_189, %c139_190] : memref<16x480xbf16, #tpu.memory_space<vmem>>, vector<16x224xbf16>
    %c3_191 = arith.constant 3 : index
    %c0_192 = arith.constant 0 : index
    %c128_193 = arith.constant 128 : index
    %200 = vector.load %arg3[%c3_191, %c0_192, %c128_193] : memref<4x16x144xbf16, #tpu.memory_space<vmem>>, vector<1x16x16xbf16>
    %201 = vector.shape_cast %200 : vector<1x16x16xbf16> to vector<16x16xbf16>
    %cst_194 = arith.constant dense<0.000000e+00> : vector<16x224xf32>
    %202 = tpu.matmul %201, %199, %cst_194 {dimension_numbers = #tpu.dot_dimension_numbers<[1], [0], [0], [1], [0, 0, 1, 1], [], []>} : vector<16x16xbf16>, vector<16x224xbf16>, vector<16x224xf32> -> vector<16x224xf32>
    %203 = arith.addf %198, %202 : vector<16x224xf32>
    %c0_195 = arith.constant 0 : index
    %c3_196 = arith.constant 3 : index
    %204 = vector.load %arg4[%c0_195, %c3_196] : memref<16x4xf32, #tpu.memory_space<vmem>>, vector<16x1xf32>
    %205 = vector.broadcast %204 : vector<16x1xf32> to vector<16x224xf32>
    %206 = arith.addf %203, %205 : vector<16x224xf32>
    %c0_197 = arith.constant 0 : index
    %c0_198 = arith.constant 0 : index
    %c0_199 = arith.constant 0 : index
    %207 = vector.load %arg5[%c0_197, %c0_198, %c0_199] : memref<1x16x224xf32, #tpu.memory_space<vmem>>, vector<1x16x224xf32>
    %208 = vector.shape_cast %207 : vector<1x16x224xf32> to vector<16x224xf32>
    %209 = vector.shape_cast %206 : vector<16x224xf32> to vector<1x16x224xf32>
    tpu.vector_store %arg5[%c0_197, %c0_198, %c0_199], %209 {strides = array<i32>} : memref<1x16x224xf32, #tpu.memory_space<vmem>>, vector<1x16x224xf32>,
    return
  }
  func.func @transform_0(%arg0: i32) -> (i32, i32, i32) {
    %c0_i32 = arith.constant 0 : i32
    %c0_i32_0 = arith.constant 0 : i32
    %c0_i32_1 = arith.constant 0 : i32
    return %arg0, %c0_i32, %c0_i32_0 : i32, i32, i32
  }
  func.func @transform_1(%arg0: i32) -> (i32, i32) {
    %c0_i32 = arith.constant 0 : i32
    %c0_i32_0 = arith.constant 0 : i32
    %c0_i32_1 = arith.constant 0 : i32
    return %c0_i32, %c0_i32_0 : i32, i32
  }
  func.func @transform_2(%arg0: i32) -> (i32, i32, i32) {
    %c0_i32 = arith.constant 0 : i32
    %c0_i32_0 = arith.constant 0 : i32
    %c0_i32_1 = arith.constant 0 : i32
    %c0_i32_2 = arith.constant 0 : i32
    return %c0_i32, %c0_i32_0, %c0_i32_1 : i32, i32, i32
  }
  func.func @transform_3(%arg0: i32) -> (i32, i32) {
    %c0_i32 = arith.constant 0 : i32
    %c0_i32_0 = arith.constant 0 : i32
    %c0_i32_1 = arith.constant 0 : i32
    return %c0_i32, %c0_i32_0 : i32, i32
  }
  func.func @transform_4(%arg0: i32) -> (i32, i32, i32) {
    %c0_i32 = arith.constant 0 : i32
    %c0_i32_0 = arith.constant 0 : i32
    %c0_i32_1 = arith.constant 0 : i32
    return %arg0, %c0_i32, %c0_i32_0 : i32, i32, i32
  }
}

</mosaic_0001>

<bundles_post_ra>
// kernel: tile.8
= control target key start
LH: loop header
LB: loop body
LE: loop exit
PB: predicated region body
PF: predicated region fallthrough
CT: control target
= control target key end

     0   :  { %s22_s0 = inlined_call_operand.vmem [shape: f32[4], index: 0, kind: input, shape index: {}]   ;;  %s23_s1 = inlined_call_operand.vmem [shape: f32[4,4], index: 1, kind: output, shape index: {}]  }
   0x1   :  { %v4_v0 = vld [vmem:[%s22_s0] ss:$0 sm:$0xff] }
   0x2   :  { %5 = vst [vmem:[%s23_s1] sm:$0xf] %v4_v0 }

// kernel: tile.9
= control target key start
LH: loop header
LB: loop body
LE: loop exit
PB: predicated region body
PF: predicated region fallthrough
CT: control target
= control target key end

     0   :  { %vm7_vm0 = vcmask 31744   ;;  %s37_s8 = smov 4   ;;  %s38_s9 = smov 8   ;;  %vm13_vm1 = vcmask 130144   ;;  %vm19_vm2 = vcmask 97344   ;;  %vm25_vm3 = vcmask 64544   ;;  %s55_s0 = inlined_call_operand.vmem [shape: f32[4,4], index: 0, kind: input, shape index: {}]   ;;  %s56_s1 = inlined_call_operand.vmem [shape: f32[16,1], index: 1, kind: output, shape index: {}]  }
   0x1   :  { %v4_v0 = vld [vmem:[%s55_s0] sm:$0xf]  ;;  %s36_s0 = smov 12  }
   0x2   :  { %5 = vst [vmem:[#allocation1] sm:$0xf] %v4_v0 }
   0x9   :  { %v10_v1 = vld [vmem:[#allocation1 + $0x3] sm:$0x1]   ;;  %v22_v2 = vld [vmem:[#allocation1 + $0x1] sm:$0x1]   ;;  %v6_v3 = vld [vmem:[#allocation1] sm:$0x1]  }
   0xa   :  { %11 = vrot.lane.b32.xlu0 %v10_v1, %s36_s0  ;;  %23 = vrot.lane.b32.xlu1 %v22_v2, %s37_s8  ;;  %v16_v4 = vld [vmem:[#allocation1 + $0x2] sm:$0x1]   ;;  %8 = vst.msk [vmem:[#allocation0] sm:$0x1] %vm7_vm0, %v6_v3  }
   0xe   :  { %17 = vrot.lane.b32.xlu0 %v16_v4, %s38_s9 }
  0x7c   :  { %v12_v5 = vpop.permute.xlu0 %11   ;;  %v24_v6 = vpop.permute.xlu1 %23  }
  0x7d   :  { %14 = vst.msk [vmem:[#allocation0] sm:$0x1] %vm13_vm1, %v12_v5  }
  0x80   :  { %v18_v7 = vpop.permute.xlu0 %17  }
  0x81   :  { %20 = vst.msk [vmem:[#allocation0] sm:$0x1] %vm19_vm2, %v18_v7  }
  0x82   :  { %26 = vst.msk [vmem:[#allocation0] sm:$0x1] %vm25_vm3, %v24_v6  }
  0x89   :  { %v30_v8 = vld [vmem:[#allocation0] sm:$0x1] }
  0x8a   :  { %32 = vst [vmem:[%s56_s1] sm:$0x1] %v30_v8 }

// kernel: tensorrt_head_forward.1
= control target key start
LH: loop header
LB: loop body
LE: loop exit
PB: predicated region body
PF: predicated region fallthrough
CT: control target
= control target key end

     0   :  { %v2305_v0 = vmov 0   ;;  %s2306_s19 = smov 10   ;;  %s2307_s24 = smov 116   ;;  %vm56_vm0 = vcmask 80896   ;;  %vm63_vm1 = vcmask 1045504   ;;  %vm119_vm2 = vcmask 89088   ;;  %s2731_s0 = inlined_call_operand.vmem [shape: bf16[1,12,480], index: 0, kind: input, shape index: {}]   ;;  %s2732_s2 = inlined_call_operand.vmem [shape: bf16[4,16,144], index: 2, kind: input, shape index: {}]   ;;  %s2733_s3 = inlined_call_operand.vmem [shape: f32[16,4], index: 3, kind: input, shape index: {}]   ;;  %s2734_s1 = inlined_call_operand.vmem [shape: f32[1,224], index: 1, kind: input, shape index: {}]   ;;  %s2735_s4 = inlined_call_operand.vmem [shape: f32[1,16,224], index: 4, kind: output, shape index: {}]  }
   0x1   :  { %102 = vmatprep.mubr.bf16.mxu0 %v2305_v0  ;;  %19 = vst [vmem:[#allocation2] sm:$0xff] %v2305_v0  ;;  %2282 = vset.pattern.permute.xlu0 %v2305_v0  ;;  %v2290_v1 = vld [vmem:[%s2731_s0 + $0x8] ss:$16 sps:$4 sm:$0x3f]   ;;  %s2308_s25 = smov 11   ;;  %s2309_s26 = smov 1   ;;  %v338_v31 = vlaneseq }
   0x2   :  { %2283 = vset.pattern.permute.xlu1 %v2305_v0  ;;  %533 = vmatprep.mubr.bf16.mxu1 %v2305_v0  ;;  %v2291_v2 = vld [vmem:[%s2731_s0] ss:$16 sps:$4 sm:$0x3f]   ;;  %v2294_v4 = vld [vmem:[%s2731_s0 + $0x4] ss:$16 sps:$4 sm:$0x3f]  }
   0x3   :  { %54 = vrot.lane.b32.xlu1 %v2290_v1, %s2306_s19  ;;  %v2293_v3 = vld [vmem:[%s2732_s2] ss:$8 sps:$4 sm:$0xff]   ;;  %50 = vrot.lane.b32.xlu0 %v2291_v2, %s2306_s19  ;;  %s2310_s27 = smov 92   ;;  %s2311_s28 = smov 104   ;;  %vm59_vm3 = vcmask 97280   ;;  %vm182_vm4 = vcmask 7168  }
   0x4   :  { %v2381_v5 = vld [vmem:[%s2733_s3] sm:$0xff]  ;;  %v2386_v6 = vld [vmem:[%s2733_s3 + $0x8] sm:$0xff]  ;;  %vm20_vm5 = vcmask 1048320   ;;  %vm22_vm6 = vcmask 785408   ;;  %v339_v32 = vshrl.u32 %v338_v31, 7  ;;  %s2313_s13 = smov 96  }
   0x5   :  { %v2295_v26 = vld [vmem:[%s2731_s0 + $0x8] ss:$16 sps:$4 sm:$0x3f]   ;;  %v2297_v27 = vld [vmem:[%s2731_s0 + $0x4] ss:$16 sps:$4 sm:$0x3f]  }
   0x6   :  { %v257_v29 = vsel %vm63_vm1, %v2297_v27, 0  ;;  %21 = vst.msk [vmem:[#allocation2 + $0x10] sm:$0xff] %vm20_vm5, %v2305_v0  ;;  %v340_v35 = vsub.s32 0, %v339_v32  ;;  %v18_v37 = vld [vmem:[%s2734_s1] sm:$0x3]  ;;  %v344_v40 = vsub.s32 1, %v339_v32 }
   0x7   :  { %35 = vrot.lane.b32.xlu1 %v2293_v3, %s2307_s24  ;;  %52 = vrot.lane.b32.xlu0 %v2294_v4, %s2306_s19  ;;  %s2312_s1 = smov 9   ;;  %v2446_v63 = vld [vmem:[%s2732_s2 + $0x10] ss:$8 sps:$4 sm:$0xff]   ;;  %s2314_s14 = smov 64   ;;  %vm493_vm11 = vcmask 72704   ;;  %vm382_vm12 = vcmask 130048  }
   0x8   :  { %v2422_v46 = vrot.slane %v18_v37, %v340_v35  ;;  %v2424_v50 = vrot.slane %v18_v37, %v344_v40  ;;  %s2315_s15 = smov 127   ;;  %s2316_s16 = smov 80   ;;  %vm668_vm13 = vcmask 1039360   ;;  %vm728_vm14 = vcmask 973824  }
   0x9   :  { %s2317_s17 = smov 119   ;;  %s2318_s18 = smov 32   ;;  %vm788_vm15 = vcmask 965632  }
   0xa   :  { %s2319_s20 = smov 48   ;;  %s2320_s21 = smov 118  }
   0xb   :  { %115 = vrot.lane.b32.xlu1 %v2294_v4, %s2308_s25  ;;  %113 = vrot.lane.b32.xlu0 %v2291_v2, %s2308_s25  ;;  %s2321_s22 = smov 112   ;;  %s2322_s23 = smov 16  }
   0xc   :  { %s2323_s24 = smov 117  }
   0xf   :  { %176 = vrot.lane.b32.xlu1 %v2291_v2, %s2309_s26  ;;  %117 = vrot.lane.b32.xlu0 %v2290_v1, %s2308_s25 }
  0x13   :  { %180 = vrot.lane.b32.xlu1 %v2290_v1, %s2309_s26  ;;  %178 = vrot.lane.b32.xlu0 %v2294_v4, %s2309_s26  ;;  %v2324_v1 = vmov 1  }
  0x17   :  { %243 = vrot.lane.b32.xlu1 %v2293_v3, %s2310_s27  ;;  %174 = vrot.lane.b32.xlu0 %v2293_v3, %s2311_s28 }
  0x1b   :  { %313 = vperm.xlu0 %2282, %v2381_v5   ;;  %318 = vperm.xlu1 %2283, %v2386_v6  }
  0x1f   :  { %2284 = vset.pattern.permute.xlu0 %v2324_v1  ;;  %2285 = vset.pattern.permute.xlu1 %v2324_v1 }
  0x75   :  { %v55_v7 = vpop.permute.xlu1 %54  ;;  %v51_v8 = vpop.permute.xlu0 %50 }
  0x79   :  { %v36_v9 = vpop.permute.xlu1 %35  ;;  %v53_v10 = vpop.permute.xlu0 %52 }
  0x7a   :  { %v58_v11 = vsel %vm56_vm0, %v53_v10, %v55_v7  ;;  %v57_v12 = vsel %vm56_vm0, %v51_v8, %v53_v10 }
  0x7b   :  { %2097 = vmatprep.subr.msk.bf16.mxu0 %vm63_vm1, %v58_v11  ;;  %v65_v13 = vsel %vm63_vm1, %v57_v12, 0 }
  0x7c   :  { %71 = vmatpush1.bf16.msra.mxu0 %v65_v13 }
  0x7d   :  { %v116_v14 = vpop.permute.xlu1 %115  ;;  %v114_v15 = vpop.permute.xlu0 %113 }
  0x7e   :  { %v120_v16 = vsel %vm119_vm2, %v114_v15, %v116_v14 }
  0x7f   :  { %2098 = vmatmul.mubr.msk.bf16.vlgmr.msra.gmra.mrb[0].mxu0 %vm59_vm3, %v36_v9  ;;  %v126_v18 = vsel %vm63_vm1, %v120_v16, 0 }
  0x80   :  { %163 = vmatprep.mubr.bf16.mxu0 %v2305_v0 }
  0x81   :  { %v177_v17 = vpop.permute.xlu1 %176  ;;  %v118_v19 = vpop.permute.xlu0 %117 }
  0x82   :  { %v121_v20 = vsel %vm119_vm2, %v116_v14, %v118_v19 }
  0x83   :  { %2099 = vmatprep.subr.msk.bf16.mxu0 %vm63_vm1, %v121_v20 }
  0x84   :  { %132 = vmatpush1.bf16.msra.mxu0 %v126_v18 }
  0x85   :  { %v181_v21 = vpop.permute.xlu1 %180  ;;  %v179_v22 = vpop.permute.xlu0 %178 }
  0x86   :  { %v183_v23 = vsel %vm182_vm4, %v177_v17, %v179_v22  ;;  %v184_v24 = vsel %vm182_vm4, %v179_v22, %v181_v21 }
  0x87   :  { %2101 = vmatprep.subr.msk.bf16.mxu0 %vm63_vm1, %v184_v24  ;;  %v189_v25 = vsel %vm63_vm1, %v183_v23, 0 }
  0x89   :  { %v175_v28 = vpop.permute.xlu0 %174  ;;  %v244_v30 = vpop.permute.xlu1 %243 }
  0x8b   :  { %2100 = vmatmul.mubr.msk.bf16.vlgmr.msra.gmra.mrb[0].mxu0 %vm59_vm3, %v2293_v3 }
  0x8c   :  { %195 = vmatpush1.bf16.msra.mxu0 %v189_v25  ;;  %226 = vmatprep.mubr.bf16.mxu0 %v2305_v0 }
  0x8d   :  { %2105 = vmatprep.subr.msk.bf16.mxu0 %vm63_vm1, %v2295_v26  ;;  %vm853_vm1 = vcmask 957440  }
  0x97   :  { %2102 = vmatmul.mubr.msk.bf16.vlgmr.msra.gmra.mrb[0].mxu0 %vm59_vm3, %v175_v28 }
  0x98   :  { %263 = vmatpush1.bf16.msra.mxu0 %v257_v29  ;;  %294 = vmatprep.mubr.bf16.mxu0 %v2305_v0 }
  0x9a   :  { %v314_v33 = vpop.permute.xlu0 %313  ;;  %v319_v36 = vpop.permute.xlu1 %318 }
  0xa3   :  { %2106 = vmatmul.mubr.msk.bf16.vlgmr.msra.gmra.mrb[0].mxu0 %vm59_vm3, %v244_v30 }
  0xa4   :  { %418 = vmatprep.mubr.bf16.mxu0 %v2305_v0 }
 0x176   :  { %v296_v34 = vpop.f32.mrb[0].mxu0 }
 0x177   :  { %v321_v38 = vadd.f32 %v314_v33, %v296_v34  ;;  %v298_v39 = vpop.f32.mrb[1].mxu0 }
 0x178   :  { %v322_v41 = vadd.f32 %v314_v33, %v298_v39  ;;  %v300_v42 = vpop.f32.mrb[2].mxu0 }
 0x179   :  { %vm325_vm7 = vcmp.ge.f32.partialorder %v321_v38, 0.0  ;;  %v329_v43 = vmul.f32 0.2, %v321_v38  ;;  %v323_v44 = vadd.f32 %v319_v36, %v300_v42  ;;  %v302_v45 = vpop.f32.mrb[3].mxu0 }
 0x17a   :  { %vm326_vm8 = vcmp.ge.f32.partialorder %v322_v41, 0.0  ;;  %v330_v47 = vmul.f32 0.2, %v322_v41  ;;  %v324_v48 = vadd.f32 %v319_v36, %v302_v45 }
 0x17b   :  { %v333_v49 = vsel %vm325_vm7, %v321_v38, %v329_v43  ;;  %vm327_vm9 = vcmp.ge.f32.partialorder %v323_v44, 0.0  ;;  %v331_v51 = vmul.f32 0.2, %v323_v44  ;;  %v2299_v43 = vld [vmem:[%s2732_s2 + $0x14] ss:$8 sps:$4 sm:$0xff]  }
 0x17c   :  { %v334_v52 = vsel %vm326_vm8, %v322_v41, %v330_v47  ;;  %vm328_vm10 = vcmp.ge.f32.partialorder %v324_v48, 0.0  ;;  %v332_v53 = vmul.f32 0.2, %v324_v48  ;;  %v348_v55 = vmul.f32 %v2422_v46, %v333_v49 }
 0x17d   :  { %v335_v54 = vsel %vm327_vm9, %v323_v44, %v331_v51  ;;  %v349_v58 = vmul.f32 %v2424_v50, %v334_v52 }
 0x17e   :  { %v350_v56 = vmul.f32 %v2422_v46, %v335_v54  ;;  %v336_v57 = vsel %vm328_vm10, %v324_v48, %v332_v53 }
 0x17f   :  { %v351_v59 = vmul.f32 %v2424_v50, %v336_v57 }
 0x180   :  { %v2430_v60 = vpack.c.bf16 %v350_v56, %v348_v55 }
 0x181   :  { %v353_v61 = vpack.c.bf16 %v351_v59, %v349_v58 }
 0x182   :  { %489 = vrot.lane.b32.xlu1 %v2430_v60, %s2312_s1 }
 0x183   :  { %355 = vst.msk [vmem:[#allocation2 + $0x10] sm:$0xff] %vm22_vm6, %v353_v61 }
 0x186   :  { %487 = vrot.lane.b32.xlu1 %v2305_v0, %s2312_s1 }
 0x18a   :  { %v2437_v62 = vld [vmem:[#allocation2 + $0x10] sm:$0xff]  ;;  %552 = vrot.lane.b32.xlu1 %v2430_v60, %s2309_s26 }
 0x18b   :  { %491 = vrot.lane.b32.xlu0 %v2437_v62, %s2312_s1 }
 0x18e   :  { %550 = vrot.lane.b32.xlu1 %v2305_v0, %s2309_s26 }
 0x18f   :  { %485 = vrot.lane.b32.xlu0 %v2446_v63, %s2313_s13 }
 0x192   :  { %610 = vrot.lane.b32.xlu1 %v2446_v63, %s2314_s14 }
 0x193   :  { %554 = vrot.lane.b32.xlu0 %v2437_v62, %s2309_s26 }
 0x196   :  { %666 = vrot.lane.b32.xlu1 %v2437_v62, %s2315_s15 }
 0x197   :  { %548 = vrot.lane.b32.xlu0 %v2446_v63, %s2316_s16 }
 0x19a   :  { %724 = vrot.lane.b32.xlu1 %v2430_v60, %s2317_s17 }
 0x19b   :  { %664 = vrot.lane.b32.xlu0 %v2430_v60, %s2315_s15 }
 0x19e   :  { %722 = vrot.lane.b32.xlu1 %v2446_v63, %s2318_s18 }
 0x19f   :  { %662 = vrot.lane.b32.xlu0 %v2446_v63, %s2319_s20 }
 0x1a2   :  { %784 = vrot.lane.b32.xlu1 %v2430_v60, %s2320_s21 }
 0x1a3   :  { %726 = vrot.lane.b32.xlu0 %v2437_v62, %s2317_s17 }
 0x1a6   :  { %376 = vrot.lane.b32.xlu1 %v2437_v62, %s2306_s19 }
 0x1a7   :  { %374 = vrot.lane.b32.xlu0 %v2430_v60, %s2306_s19 }
 0x1aa   :  { %367 = vrot.lane.b32.xlu1 %v2446_v63, %s2321_s22 }
 0x1ab   :  { %372 = vrot.lane.b32.xlu0 %v2305_v0, %s2306_s19 }
 0x1ae   :  { %431 = vrot.lane.b32.xlu1 %v2430_v60, %s2308_s25 }
 0x1af   :  { %786 = vrot.lane.b32.xlu0 %v2437_v62, %s2320_s21 }
 0x1b2   :  { %429 = vrot.lane.b32.xlu1 %v2305_v0, %s2308_s25 }
 0x1b3   :  { %782 = vrot.lane.b32.xlu0 %v2446_v63, %s2322_s23 }
 0x1b6   :  { %851 = vrot.lane.b32.xlu1 %v2437_v62, %s2323_s24 }
 0x1b7   :  { %433 = vrot.lane.b32.xlu0 %v2437_v62, %s2308_s25 }
 0x1ba   :  { %916 = vperm.xlu1 %2285, %v2386_v6  }
 0x1bb   :  { %849 = vrot.lane.b32.xlu0 %v2430_v60, %s2323_s24 }
 0x1bf   :  { %911 = vperm.xlu0 %2284, %v2381_v5  }
 0x1f4   :  { %v490_v2 = vpop.permute.xlu1 %489 }
 0x1f8   :  { %v488_v3 = vpop.permute.xlu1 %487 }
 0x1f9   :  { %v494_v9 = vsel %vm493_vm11, %v488_v3, %v490_v2 }
 0x1fc   :  { %v553_v4 = vpop.permute.xlu1 %552 }
 0x1fd   :  { %v492_v7 = vpop.permute.xlu0 %491 }
 0x1fe   :  { %v495_v8 = vsel %vm493_vm11, %v490_v2, %v492_v7 }
 0x1ff   :  { %501 = vmatprep.subr.bf16.mxu1 %v495_v8 }
 0x200   :  { %502 = vmatpush1.bf16.msra.mxu1 %v494_v9  ;;  %v551_v10 = vpop.permute.xlu1 %550 }
 0x201   :  { %v486_v11 = vpop.permute.xlu0 %485  ;;  %v556_v15 = vsel %vm182_vm4, %v551_v10, %v553_v4 }
 0x203   :  { %2112 = vmatmul.mubr.msk.bf16.vlgmr.msra.gmra.mrb[0].mxu1 %vm382_vm12, %v486_v11 }
 0x204   :  { %v611_v12 = vpop.permute.xlu1 %610  ;;  %595 = vmatprep.mubr.bf16.mxu1 %v2305_v0 }
 0x205   :  { %v555_v13 = vpop.permute.xlu0 %554 }
 0x206   :  { %v557_v14 = vsel %vm182_vm4, %v553_v4, %v555_v13 }
 0x207   :  { %563 = vmatprep.subr.bf16.mxu1 %v557_v14 }
 0x208   :  { %564 = vmatpush1.bf16.msra.mxu1 %v556_v15  ;;  %v667_v16 = vpop.permute.xlu1 %666 }
 0x209   :  { %v549_v17 = vpop.permute.xlu0 %548  ;;  %615 = vmatprep.subr.bf16.mxu1 %v2437_v62 }
 0x20c   :  { %v725_v18 = vpop.permute.xlu1 %724 }
 0x20d   :  { %v665_v19 = vpop.permute.xlu0 %664 }
 0x20e   :  { %v669_v27 = vsel %vm668_vm13, %v665_v19, %v667_v16  ;;  %v2325_v19 = vmov 2  }
 0x20f   :  { %2113 = vmatmul.mubr.msk.bf16.vlgmr.msra.gmra.mrb[0].mxu1 %vm382_vm12, %v549_v17  ;;  %2286 = vset.pattern.permute.xlu0 %v2325_v19 }
 0x210   :  { %616 = vmatpush1.bf16.msra.mxu1 %v2430_v60  ;;  %v723_v20 = vpop.permute.xlu1 %722  ;;  %647 = vmatprep.mubr.bf16.mxu1 %v2305_v0 }
 0x211   :  { %v663_v21 = vpop.permute.xlu0 %662  ;;  %675 = vmatprep.subr.bf16.mxu1 %v667_v16  ;;  %2287 = vset.pattern.permute.xlu1 %v2325_v19 }
 0x214   :  { %v785_v22 = vpop.permute.xlu1 %784 }
 0x215   :  { %v727_v23 = vpop.permute.xlu0 %726 }
 0x216   :  { %v729_v34 = vsel %vm728_vm14, %v725_v18, %v727_v23  ;;  %v2300_v18 = vld [vmem:[%s2732_s2 + $0x20] ss:$8 sps:$4 sm:$0xff]  }
 0x218   :  { %v377_v24 = vpop.permute.xlu1 %376 }
 0x219   :  { %v375_v25 = vpop.permute.xlu0 %374 }
 0x21a   :  { %v379_v26 = vsel %vm56_vm0, %v375_v25, %v377_v24 }
 0x21b   :  { %2114 = vmatmul.mubr.msk.bf16.vlgmr.msra.gmra.mrb[0].mxu1 %vm382_vm12, %v611_v12  ;;  %386 = vmatprep.subr.bf16.mxu0 %v379_v26 }
 0x21c   :  { %676 = vmatpush1.bf16.msra.mxu1 %v669_v27  ;;  %v368_v28 = vpop.permute.xlu1 %367  ;;  %707 = vmatprep.mubr.bf16.mxu1 %v2305_v0 }
 0x21d   :  { %v373_v29 = vpop.permute.xlu0 %372  ;;  %735 = vmatprep.subr.bf16.mxu1 %v727_v23 }
 0x21e   :  { %v378_v30 = vsel %vm56_vm0, %v373_v29, %v375_v25 }
 0x21f   :  { %387 = vmatpush1.bf16.msra.mxu0 %v378_v30 }
 0x220   :  { %v432_v32 = vpop.permute.xlu1 %431 }
 0x221   :  { %v787_v31 = vpop.permute.xlu0 %786 }
 0x222   :  { %2110 = vmatmul.mubr.msk.bf16.vlgmr.msra.gmra.mrb[4].mxu0 %vm382_vm12, %v368_v28  ;;  %v789_v39 = vsel %vm788_vm15, %v785_v22, %v787_v31 }
 0x223   :  { %474 = vmatprep.mubr.bf16.mxu0 %v2305_v0 }
 0x224   :  { %v430_v35 = vpop.permute.xlu1 %429 }
 0x225   :  { %v783_v33 = vpop.permute.xlu0 %782  ;;  %v435_v38 = vsel %vm119_vm2, %v430_v35, %v432_v32 }
 0x227   :  { %2115 = vmatmul.mubr.msk.bf16.vlgmr.msra.gmra.mrb[0].mxu1 %vm382_vm12, %v663_v21 }
 0x228   :  { %736 = vmatpush1.bf16.msra.mxu1 %v729_v34  ;;  %767 = vmatprep.mubr.bf16.mxu1 %v2305_v0  ;;  %v852_v40 = vpop.permute.xlu1 %851 }
 0x229   :  { %v434_v36 = vpop.permute.xlu0 %433  ;;  %795 = vmatprep.subr.bf16.mxu1 %v787_v31 }
 0x22a   :  { %v436_v37 = vsel %vm119_vm2, %v432_v32, %v434_v36 }
 0x22b   :  { %442 = vmatprep.subr.bf16.mxu0 %v436_v37 }
 0x22c   :  { %443 = vmatpush1.bf16.msra.mxu0 %v435_v38 }
 0x22d   :  { %v850_v41 = vpop.permute.xlu0 %849 }
 0x22e   :  { %v854_v42 = vsel %vm853_vm1, %v850_v41, %v852_v40 }
 0x22f   :  { %2111 = vmatmul.mubr.msk.bf16.vlgmr.msra.gmra.mrb[4].mxu0 %vm382_vm12, %v2446_v63 }
 0x230   :  { %1004 = vmatprep.mubr.bf16.mxu0 %v2305_v0 }
 0x233   :  { %2116 = vmatmul.mubr.msk.bf16.vlgmr.msra.gmra.mrb[0].mxu1 %vm382_vm12, %v723_v20 }
 0x234   :  { %796 = vmatpush1.bf16.msra.mxu1 %v789_v39  ;;  %827 = vmatprep.mubr.bf16.mxu1 %v2305_v0 }
 0x235   :  { %860 = vmatprep.subr.bf16.mxu1 %v852_v40 }
 0x239   :  { %v917_v56 = vpop.permute.xlu1 %916 }
 0x23e   :  { %v912_v51 = vpop.permute.xlu0 %911 }
 0x23f   :  { %2117 = vmatmul.mubr.msk.bf16.vlgmr.msra.gmra.mrb[0].mxu1 %vm382_vm12, %v783_v33 }
 0x240   :  { %861 = vmatpush1.bf16.msra.mxu1 %v854_v42  ;;  %892 = vmatprep.mubr.bf16.mxu1 %v2305_v0 }
 0x24b   :  { %2121 = vmatmul.mubr.msk.bf16.vlgmr.msra.gmra.mrb[0].mxu1 %vm382_vm12, %v2299_v43 }
 0x24c   :  { %1585 = vmatprep.mubr.bf16.mxu1 %v2305_v0 }
 0x302   :  { %v476_v44 = vpop.f32.mrb[4].mxu0 }
 0x303   :  { %v478_v45 = vpop.f32.mrb[5].mxu0 }
 0x304   :  { %v480_v47 = vpop.f32.mrb[6].mxu0 }
 0x305   :  { %v482_v48 = vpop.f32.mrb[7].mxu0 }
 0x31e   :  { %v894_v49 = vpop.f32.mrb[0].mxu1 }
 0x31f   :  { %v2152_v52 = vadd.f32 %v894_v49, %v476_v44  ;;  %v896_v53 = vpop.f32.mrb[1].mxu1 }
 0x320   :  { %v2153_v54 = vadd.f32 %v896_v53, %v478_v45  ;;  %v898_v55 = vpop.f32.mrb[2].mxu1 }
 0x321   :  { %v919_v57 = vadd.f32 %v2152_v52, %v912_v51  ;;  %v2154_v58 = vadd.f32 %v898_v55, %v480_v47  ;;  %v900_v59 = vpop.f32.mrb[3].mxu1 }
 0x322   :  { %v920_v60 = vadd.f32 %v2153_v54, %v912_v51  ;;  %v2155_v61 = vadd.f32 %v900_v59, %v482_v48 }
 0x323   :  { %vm923_vm3 = vcmp.ge.f32.partialorder %v919_v57, 0.0  ;;  %v927_v62 = vmul.f32 0.2, %v919_v57  ;;  %v921_v63 = vadd.f32 %v2154_v58, %v917_v56 }
 0x324   :  { %vm924_vm5 = vcmp.ge.f32.partialorder %v920_v60, 0.0  ;;  %v928_v1 = vmul.f32 0.2, %v920_v60  ;;  %v922_v2 = vadd.f32 %v2155_v61, %v917_v56  ;;  %v2301_v61 = vld [vmem:[%s2732_s2 + $0x24] ss:$8 sps:$4 sm:$0xff]  }
 0x325   :  { %v931_v3 = vsel %vm923_vm3, %v919_v57, %v927_v62  ;;  %vm925_vm7 = vcmp.ge.f32.partialorder %v921_v63, 0.0  ;;  %v929_v4 = vmul.f32 0.2, %v921_v63 }
 0x326   :  { %v932_v7 = vsel %vm924_vm5, %v920_v60, %v928_v1  ;;  %vm926_vm8 = vcmp.ge.f32.partialorder %v922_v2, 0.0  ;;  %v930_v8 = vmul.f32 0.2, %v922_v2  ;;  %v935_v10 = vmul.f32 %v931_v3, %v2422_v46 }
 0x327   :  { %v933_v9 = vsel %vm925_vm7, %v921_v63, %v929_v4  ;;  %v936_v13 = vmul.f32 %v932_v7, %v2424_v50 }
 0x328   :  { %v934_v11 = vsel %vm926_vm8, %v922_v2, %v930_v8  ;;  %v937_v12 = vmul.f32 %v933_v9, %v2422_v46 }
 0x329   :  { %v938_v14 = vmul.f32 %v934_v11, %v2424_v50 }
 0x32a   :  { %v2536_v15 = vpack.c.bf16 %v937_v12, %v935_v10 }
 0x32b   :  { %v940_v16 = vpack.c.bf16 %v938_v14, %v936_v13 }
 0x32c   :  { %961 = vrot.lane.b32.xlu1 %v2536_v15, %s2306_s19 }
 0x32d   :  { %942 = vst.msk [vmem:[#allocation2 + $0x10] sm:$0xff] %vm22_vm6, %v940_v16 }
 0x330   :  { %959 = vrot.lane.b32.xlu1 %v2305_v0, %s2306_s19 }
 0x334   :  { %v2543_v17 = vld [vmem:[#allocation2 + $0x10] sm:$0xff]  ;;  %1017 = vrot.lane.b32.xlu1 %v2536_v15, %s2308_s25 }
 0x335   :  { %963 = vrot.lane.b32.xlu0 %v2543_v17, %s2306_s19 }
 0x338   :  { %1015 = vrot.lane.b32.xlu1 %v2305_v0, %s2308_s25 }
 0x339   :  { %954 = vrot.lane.b32.xlu0 %v2300_v18, %s2321_s22 }
 0x33c   :  { %1077 = vrot.lane.b32.xlu1 %v2543_v17, %s2312_s1 }
 0x33d   :  { %1019 = vrot.lane.b32.xlu0 %v2543_v17, %s2308_s25 }
 0x340   :  { %1071 = vrot.lane.b32.xlu1 %v2300_v18, %s2313_s13 }
 0x341   :  { %1075 = vrot.lane.b32.xlu0 %v2536_v15, %s2312_s1 }
 0x344   :  { %1139 = vrot.lane.b32.xlu1 %v2543_v17, %s2309_s26 }
 0x345   :  { %1073 = vrot.lane.b32.xlu0 %v2305_v0, %s2312_s1 }
 0x348   :  { %1133 = vrot.lane.b32.xlu1 %v2300_v18, %s2316_s16 }
 0x349   :  { %1137 = vrot.lane.b32.xlu0 %v2536_v15, %s2309_s26 }
 0x34c   :  { %1249 = vrot.lane.b32.xlu1 %v2536_v15, %s2315_s15 }
 0x34d   :  { %1135 = vrot.lane.b32.xlu0 %v2305_v0, %s2309_s26 }
 0x350   :  { %1247 = vrot.lane.b32.xlu1 %v2300_v18, %s2319_s20 }
 0x351   :  { %1195 = vrot.lane.b32.xlu0 %v2300_v18, %s2314_s14 }
 0x354   :  { %1310 = vrot.lane.b32.xlu1 %v2543_v17, %s2317_s17 }
 0x355   :  { %1251 = vrot.lane.b32.xlu0 %v2543_v17, %s2315_s15 }
 0x358   :  { %1367 = vrot.lane.b32.xlu1 %v2536_v15, %s2320_s21 }
 0x359   :  { %1308 = vrot.lane.b32.xlu0 %v2536_v15, %s2317_s17 }
 0x35c   :  { %1365 = vrot.lane.b32.xlu1 %v2300_v18, %s2322_s23 }
 0x35d   :  { %1306 = vrot.lane.b32.xlu0 %v2300_v18, %s2318_s18 }
 0x360   :  { %1433 = vrot.lane.b32.xlu1 %v2543_v17, %s2323_s24 }
 0x361   :  { %1369 = vrot.lane.b32.xlu0 %v2543_v17, %s2320_s21 }
 0x364   :  { %1497 = vperm.xlu1 %2287, %v2386_v6  }
 0x365   :  { %1431 = vrot.lane.b32.xlu0 %v2536_v15, %s2323_s24 }
 0x369   :  { %1492 = vperm.xlu0 %2286, %v2381_v5  }
 0x39e   :  { %v962_v20 = vpop.permute.xlu1 %961 }
 0x3a2   :  { %v960_v21 = vpop.permute.xlu1 %959 }
 0x3a3   :  { %v965_v25 = vsel %vm56_vm0, %v960_v21, %v962_v20 }
 0x3a6   :  { %v1018_v22 = vpop.permute.xlu1 %1017 }
 0x3a7   :  { %v964_v23 = vpop.permute.xlu0 %963 }
 0x3a8   :  { %v966_v24 = vsel %vm56_vm0, %v962_v20, %v964_v23 }
 0x3a9   :  { %972 = vmatprep.subr.bf16.mxu0 %v966_v24 }
 0x3aa   :  { %973 = vmatpush1.bf16.msra.mxu0 %v965_v25  ;;  %v1016_v26 = vpop.permute.xlu1 %1015 }
 0x3ab   :  { %v955_v27 = vpop.permute.xlu0 %954  ;;  %v1021_v31 = vsel %vm119_vm2, %v1016_v26, %v1018_v22 }
 0x3ad   :  { %2125 = vmatmul.mubr.msk.bf16.vlgmr.msra.gmra.mrb[8].mxu0 %vm382_vm12, %v955_v27 }
 0x3ae   :  { %1060 = vmatprep.mubr.bf16.mxu0 %v2305_v0  ;;  %v1078_v29 = vpop.permute.xlu1 %1077 }
 0x3af   :  { %v1020_v28 = vpop.permute.xlu0 %1019 }
 0x3b0   :  { %v1022_v30 = vsel %vm119_vm2, %v1018_v22, %v1020_v28 }
 0x3b1   :  { %1028 = vmatprep.subr.bf16.mxu0 %v1022_v30 }
 0x3b2   :  { %1029 = vmatpush1.bf16.msra.mxu0 %v1021_v31  ;;  %v1072_v34 = vpop.permute.xlu1 %1071 }
 0x3b3   :  { %v1076_v32 = vpop.permute.xlu0 %1075 }
 0x3b4   :  { %v1080_v33 = vsel %vm493_vm11, %v1076_v32, %v1078_v29 }
 0x3b5   :  { %1086 = vmatprep.subr.bf16.mxu0 %v1080_v33 }
 0x3b6   :  { %v1140_v38 = vpop.permute.xlu1 %1139 }
 0x3b7   :  { %v1074_v35 = vpop.permute.xlu0 %1073 }
 0x3b8   :  { %v1079_v36 = vsel %vm493_vm11, %v1074_v35, %v1076_v32 }
 0x3b9   :  { %2126 = vmatmul.mubr.msk.bf16.vlgmr.msra.gmra.mrb[8].mxu0 %vm382_vm12, %v2300_v18 }
 0x3ba   :  { %1087 = vmatpush1.bf16.msra.mxu0 %v1079_v36  ;;  %1118 = vmatprep.mubr.bf16.mxu0 %v2305_v0  ;;  %v1134_v42 = vpop.permute.xlu1 %1133 }
 0x3bb   :  { %v1138_v37 = vpop.permute.xlu0 %1137 }
 0x3bc   :  { %v1142_v39 = vsel %vm182_vm4, %v1138_v37, %v1140_v38 }
 0x3bd   :  { %1148 = vmatprep.subr.bf16.mxu0 %v1142_v39 }
 0x3be   :  { %v1250_v44 = vpop.permute.xlu1 %1249 }
 0x3bf   :  { %v1136_v40 = vpop.permute.xlu0 %1135 }
 0x3c0   :  { %v1141_v41 = vsel %vm182_vm4, %v1136_v40, %v1138_v37 }
 0x3c2   :  { %v1248_v47 = vpop.permute.xlu1 %1247 }
 0x3c3   :  { %v1196_v43 = vpop.permute.xlu0 %1195 }
 0x3c5   :  { %2127 = vmatmul.mubr.msk.bf16.vlgmr.msra.gmra.mrb[8].mxu0 %vm382_vm12, %v1072_v34 }
 0x3c6   :  { %1149 = vmatpush1.bf16.msra.mxu0 %v1141_v41  ;;  %1180 = vmatprep.mubr.bf16.mxu0 %v2305_v0  ;;  %v1311_v51 = vpop.permute.xlu1 %1310 }
 0x3c7   :  { %1200 = vmatprep.subr.bf16.mxu0 %v2543_v17  ;;  %v1252_v45 = vpop.permute.xlu0 %1251 }
 0x3c8   :  { %v1253_v48 = vsel %vm668_vm13, %v1250_v44, %v1252_v45 }
 0x3ca   :  { %v1368_v54 = vpop.permute.xlu1 %1367 }
 0x3cb   :  { %v1309_v49 = vpop.permute.xlu0 %1308 }
 0x3cc   :  { %v1312_v53 = vsel %vm728_vm14, %v1309_v49, %v1311_v51 }
 0x3ce   :  { %v1366_v56 = vpop.permute.xlu1 %1365 }
 0x3cf   :  { %v1307_v52 = vpop.permute.xlu0 %1306 }
 0x3d1   :  { %2128 = vmatmul.mubr.msk.bf16.vlgmr.msra.gmra.mrb[8].mxu0 %vm382_vm12, %v1134_v42 }
 0x3d2   :  { %1201 = vmatpush1.bf16.msra.mxu0 %v2536_v15  ;;  %1232 = vmatprep.mubr.bf16.mxu0 %v2305_v0  ;;  %v1434_v58 = vpop.permute.xlu1 %1433 }
 0x3d3   :  { %1259 = vmatprep.subr.bf16.mxu0 %v1252_v45  ;;  %v1370_v55 = vpop.permute.xlu0 %1369 }
 0x3d4   :  { %v1371_v57 = vsel %vm788_vm15, %v1368_v54, %v1370_v55 }
 0x3d7   :  { %v1432_v59 = vpop.permute.xlu0 %1431 }
 0x3d8   :  { %v1435_v60 = vsel %vm853_vm1, %v1432_v59, %v1434_v58 }
 0x3dd   :  { %2129 = vmatmul.mubr.msk.bf16.vlgmr.msra.gmra.mrb[8].mxu0 %vm382_vm12, %v1196_v43 }
 0x3de   :  { %1260 = vmatpush1.bf16.msra.mxu0 %v1253_v48  ;;  %1291 = vmatprep.mubr.bf16.mxu0 %v2305_v0 }
 0x3df   :  { %1318 = vmatprep.subr.bf16.mxu0 %v1311_v51 }
 0x3e3   :  { %v1498_v1 = vpop.permute.xlu1 %1497 }
 0x3e8   :  { %v1493_v62 = vpop.permute.xlu0 %1492 }
 0x3e9   :  { %2130 = vmatmul.mubr.msk.bf16.vlgmr.msra.gmra.mrb[8].mxu0 %vm382_vm12, %v1248_v47 }
 0x3ea   :  { %1319 = vmatpush1.bf16.msra.mxu0 %v1312_v53  ;;  %1350 = vmatprep.mubr.bf16.mxu0 %v2305_v0 }
 0x3eb   :  { %1377 = vmatprep.subr.bf16.mxu0 %v1370_v55 }
 0x3f5   :  { %2131 = vmatmul.mubr.msk.bf16.vlgmr.msra.gmra.mrb[8].mxu0 %vm382_vm12, %v1307_v52  ;;  %v2304_v52 = vld [vmem:[#allocation2] sm:$0xff] }
 0x3f6   :  { %1378 = vmatpush1.bf16.msra.mxu0 %v1371_v57  ;;  %1409 = vmatprep.mubr.bf16.mxu0 %v2305_v0 }
 0x3f7   :  { %1441 = vmatprep.subr.bf16.mxu0 %v1434_v58 }
 0x401   :  { %2132 = vmatmul.mubr.msk.bf16.vlgmr.msra.gmra.mrb[8].mxu0 %vm382_vm12, %v1366_v56 }
 0x402   :  { %1442 = vmatpush1.bf16.msra.mxu0 %v1435_v60  ;;  %1473 = vmatprep.mubr.bf16.mxu0 %v2305_v0 }
 0x40d   :  { %2136 = vmatmul.mubr.msk.bf16.vlgmr.msra.gmra.mrb[8].mxu0 %vm382_vm12, %v2301_v61 }
 0x4e0   :  { %v1475_v63 = vpop.f32.mrb[8].mxu0 }
 0x4e1   :  { %v1500_v2 = vadd.f32 %v1493_v62, %v1475_v63  ;;  %v1477_v3 = vpop.f32.mrb[9].mxu0 }
 0x4e2   :  { %v1501_v4 = vadd.f32 %v1493_v62, %v1477_v3  ;;  %v1479_v7 = vpop.f32.mrb[10].mxu0 }
 0x4e3   :  { %vm1504_vm9 = vcmp.ge.f32.partialorder %v1500_v2, 0.0  ;;  %v1508_v8 = vmul.f32 0.2, %v1500_v2  ;;  %v1502_v9 = vadd.f32 %v1498_v1, %v1479_v7  ;;  %v1481_v10 = vpop.f32.mrb[11].mxu0 }
 0x4e4   :  { %vm1505_vm10 = vcmp.ge.f32.partialorder %v1501_v4, 0.0  ;;  %v1509_v11 = vmul.f32 0.2, %v1501_v4  ;;  %v1503_v12 = vadd.f32 %v1498_v1, %v1481_v10 }
 0x4e5   :  { %v1512_v13 = vsel %vm1504_vm9, %v1500_v2, %v1508_v8  ;;  %vm1506_vm3 = vcmp.ge.f32.partialorder %v1502_v9, 0.0  ;;  %v1510_v14 = vmul.f32 0.2, %v1502_v9  ;;  %v2303_v2 = vld [vmem:[%s2732_s2 + $0x34] ss:$8 sps:$4 sm:$0xff]  }
 0x4e6   :  { %v1513_v15 = vsel %vm1505_vm10, %v1501_v4, %v1509_v11  ;;  %vm1507_vm5 = vcmp.ge.f32.partialorder %v1503_v12, 0.0  ;;  %v1511_v16 = vmul.f32 0.2, %v1503_v12  ;;  %v1516_v18 = vmul.f32 %v1512_v13, %v2422_v46 }
 0x4e7   :  { %v1514_v17 = vsel %vm1506_vm3, %v1502_v9, %v1510_v14  ;;  %v1517_v21 = vmul.f32 %v1513_v15, %v2424_v50 }
 0x4e8   :  { %v1518_v19 = vmul.f32 %v1514_v17, %v2422_v46  ;;  %v1515_v20 = vsel %vm1507_vm5, %v1503_v12, %v1511_v16  ;;  %v2302_v46 = vld [vmem:[%s2732_s2 + $0x30] ss:$8 sps:$4 sm:$0xff]  }
 0x4e9   :  { %v1519_v22 = vmul.f32 %v1515_v20, %v2424_v50  ;;  %v2326_v50 = vmov 3  }
 0x4ea   :  { %v2631_v23 = vpack.c.bf16 %v1518_v19, %v1516_v18  ;;  %2288 = vset.pattern.permute.xlu0 %v2326_v50  ;;  %2289 = vset.pattern.permute.xlu1 %v2326_v50 }
 0x4eb   :  { %v1521_v24 = vpack.c.bf16 %v1519_v22, %v1517_v21 }
 0x4ec   :  { %1542 = vrot.lane.b32.xlu1 %v2631_v23, %s2306_s19 }
 0x4ed   :  { %1523 = vst.msk [vmem:[#allocation2 + $0x10] sm:$0xff] %vm22_vm6, %v1521_v24 }
 0x4f0   :  { %1540 = vrot.lane.b32.xlu1 %v2305_v0, %s2306_s19 }
 0x4f4   :  { %v2638_v25 = vld [vmem:[#allocation2 + $0x10] sm:$0xff]  ;;  %1598 = vrot.lane.b32.xlu1 %v2631_v23, %s2308_s25 }
 0x4f5   :  { %1544 = vrot.lane.b32.xlu0 %v2638_v25, %s2306_s19 }
 0x4f8   :  { %1596 = vrot.lane.b32.xlu1 %v2305_v0, %s2308_s25 }
 0x4f9   :  { %1535 = vrot.lane.b32.xlu0 %v2302_v46, %s2321_s22 }
 0x4fc   :  { %1658 = vrot.lane.b32.xlu1 %v2638_v25, %s2312_s1 }
 0x4fd   :  { %1600 = vrot.lane.b32.xlu0 %v2638_v25, %s2308_s25 }
 0x500   :  { %1652 = vrot.lane.b32.xlu1 %v2302_v46, %s2313_s13 }
 0x501   :  { %1656 = vrot.lane.b32.xlu0 %v2631_v23, %s2312_s1 }
 0x504   :  { %1720 = vrot.lane.b32.xlu1 %v2638_v25, %s2309_s26 }
 0x505   :  { %1654 = vrot.lane.b32.xlu0 %v2305_v0, %s2312_s1 }
 0x508   :  { %1714 = vrot.lane.b32.xlu1 %v2302_v46, %s2316_s16 }
 0x509   :  { %1718 = vrot.lane.b32.xlu0 %v2631_v23, %s2309_s26 }
 0x50c   :  { %1830 = vrot.lane.b32.xlu1 %v2631_v23, %s2315_s15 }
 0x50d   :  { %1716 = vrot.lane.b32.xlu0 %v2305_v0, %s2309_s26 }
 0x510   :  { %1828 = vrot.lane.b32.xlu1 %v2302_v46, %s2319_s20 }
 0x511   :  { %1776 = vrot.lane.b32.xlu0 %v2302_v46, %s2314_s14 }
 0x514   :  { %1891 = vrot.lane.b32.xlu1 %v2638_v25, %s2317_s17 }
 0x515   :  { %1832 = vrot.lane.b32.xlu0 %v2638_v25, %s2315_s15 }
 0x518   :  { %1948 = vrot.lane.b32.xlu1 %v2631_v23, %s2320_s21 }
 0x519   :  { %1889 = vrot.lane.b32.xlu0 %v2631_v23, %s2317_s17 }
 0x51c   :  { %1946 = vrot.lane.b32.xlu1 %v2302_v46, %s2322_s23 }
 0x51d   :  { %1887 = vrot.lane.b32.xlu0 %v2302_v46, %s2318_s18 }
 0x520   :  { %2014 = vrot.lane.b32.xlu1 %v2638_v25, %s2323_s24 }
 0x521   :  { %1950 = vrot.lane.b32.xlu0 %v2638_v25, %s2320_s21 }
 0x524   :  { %2078 = vperm.xlu1 %2289, %v2386_v6  }
 0x525   :  { %2012 = vrot.lane.b32.xlu0 %v2631_v23, %s2323_s24 }
 0x529   :  { %2073 = vperm.xlu0 %2288, %v2381_v5  }
 0x55e   :  { %v1543_v26 = vpop.permute.xlu1 %1542 }
 0x562   :  { %v1541_v27 = vpop.permute.xlu1 %1540 }
 0x563   :  { %v1546_v31 = vsel %vm56_vm0, %v1541_v27, %v1543_v26 }
 0x566   :  { %v1599_v28 = vpop.permute.xlu1 %1598 }
 0x567   :  { %v1545_v29 = vpop.permute.xlu0 %1544 }
 0x568   :  { %v1547_v30 = vsel %vm56_vm0, %v1543_v26, %v1545_v29 }
 0x569   :  { %1553 = vmatprep.subr.bf16.mxu1 %v1547_v30 }
 0x56a   :  { %1554 = vmatpush1.bf16.msra.mxu1 %v1546_v31  ;;  %v1597_v32 = vpop.permute.xlu1 %1596 }
 0x56b   :  { %v1536_v33 = vpop.permute.xlu0 %1535  ;;  %v1602_v35 = vsel %vm119_vm2, %v1597_v32, %v1599_v28 }
 0x56d   :  { %2140 = vmatmul.mubr.msk.bf16.vlgmr.msra.gmra.mrb[4].mxu1 %vm382_vm12, %v1536_v33 }
 0x56e   :  { %1641 = vmatprep.mubr.bf16.mxu1 %v2305_v0  ;;  %v1659_v5 = vpop.permute.xlu1 %1658 }
 0x56f   :  { %v1601_v34 = vpop.permute.xlu0 %1600 }
 0x570   :  { %v1603_v6 = vsel %vm119_vm2, %v1599_v28, %v1601_v34 }
 0x571   :  { %1609 = vmatprep.subr.bf16.mxu1 %v1603_v6 }
 0x572   :  { %1610 = vmatpush1.bf16.msra.mxu1 %v1602_v35  ;;  %v1653_v38 = vpop.permute.xlu1 %1652 }
 0x573   :  { %v1657_v36 = vpop.permute.xlu0 %1656 }
 0x574   :  { %v1661_v37 = vsel %vm493_vm11, %v1657_v36, %v1659_v5 }
 0x575   :  { %1667 = vmatprep.subr.bf16.mxu1 %v1661_v37 }
 0x576   :  { %v1721_v42 = vpop.permute.xlu1 %1720 }
 0x577   :  { %v1655_v39 = vpop.permute.xlu0 %1654 }
 0x578   :  { %v1660_v40 = vsel %vm493_vm11, %v1655_v39, %v1657_v36 }
 0x579   :  { %2141 = vmatmul.mubr.msk.bf16.vlgmr.msra.gmra.mrb[4].mxu1 %vm382_vm12, %v2302_v46 }
 0x57a   :  { %1668 = vmatpush1.bf16.msra.mxu1 %v1660_v40  ;;  %1699 = vmatprep.mubr.bf16.mxu1 %v2305_v0  ;;  %v1715_v47 = vpop.permute.xlu1 %1714 }
 0x57b   :  { %v1719_v41 = vpop.permute.xlu0 %1718 }
 0x57c   :  { %v1723_v43 = vsel %vm182_vm4, %v1719_v41, %v1721_v42 }
 0x57d   :  { %1729 = vmatprep.subr.bf16.mxu1 %v1723_v43 }
 0x57e   :  { %v1831_v49 = vpop.permute.xlu1 %1830 }
 0x57f   :  { %v1717_v44 = vpop.permute.xlu0 %1716 }
 0x580   :  { %v1722_v45 = vsel %vm182_vm4, %v1717_v44, %v1719_v41 }
 0x582   :  { %v1829_v53 = vpop.permute.xlu1 %1828 }
 0x583   :  { %v1777_v48 = vpop.permute.xlu0 %1776 }
 0x585   :  { %2142 = vmatmul.mubr.msk.bf16.vlgmr.msra.gmra.mrb[4].mxu1 %vm382_vm12, %v1653_v38 }
 0x586   :  { %1730 = vmatpush1.bf16.msra.mxu1 %v1722_v45  ;;  %1761 = vmatprep.mubr.bf16.mxu1 %v2305_v0  ;;  %v1892_v0 = vpop.permute.xlu1 %1891 }
 0x587   :  { %1781 = vmatprep.subr.bf16.mxu1 %v2638_v25  ;;  %v1833_v51 = vpop.permute.xlu0 %1832 }
 0x588   :  { %v1834_v54 = vsel %vm668_vm13, %v1831_v49, %v1833_v51 }
 0x58a   :  { %v1949_v58 = vpop.permute.xlu1 %1948 }
 0x58b   :  { %v1890_v55 = vpop.permute.xlu0 %1889 }
 0x58c   :  { %v1893_v57 = vsel %vm728_vm14, %v1890_v55, %v1892_v0 }
 0x58e   :  { %v1947_v60 = vpop.permute.xlu1 %1946 }
 0x58f   :  { %v1888_v56 = vpop.permute.xlu0 %1887 }
 0x591   :  { %2143 = vmatmul.mubr.msk.bf16.vlgmr.msra.gmra.mrb[4].mxu1 %vm382_vm12, %v1715_v47 }
 0x592   :  { %1782 = vmatpush1.bf16.msra.mxu1 %v2631_v23  ;;  %1813 = vmatprep.mubr.bf16.mxu1 %v2304_v52  ;;  %v2015_v62 = vpop.permute.xlu1 %2014 }
 0x593   :  { %1840 = vmatprep.subr.bf16.mxu1 %v1833_v51  ;;  %v1951_v59 = vpop.permute.xlu0 %1950 }
 0x594   :  { %v1952_v61 = vsel %vm788_vm15, %v1949_v58, %v1951_v59 }
 0x597   :  { %v2013_v63 = vpop.permute.xlu0 %2012 }
 0x598   :  { %v2016_v1 = vsel %vm853_vm1, %v2013_v63, %v2015_v62 }
 0x59d   :  { %2144 = vmatmul.mubr.msk.bf16.vlgmr.msra.gmra.mrb[4].mxu1 %vm382_vm12, %v1777_v48 }
 0x59e   :  { %1841 = vmatpush1.bf16.msra.mxu1 %v1834_v54  ;;  %1872 = vmatprep.mubr.bf16.mxu1 %v2304_v52 }
 0x59f   :  { %1899 = vmatprep.subr.bf16.mxu1 %v1892_v0 }
 0x5a3   :  { %v2079_v7 = vpop.permute.xlu1 %2078 }
 0x5a8   :  { %v2074_v3 = vpop.permute.xlu0 %2073 }
 0x5a9   :  { %2145 = vmatmul.mubr.msk.bf16.vlgmr.msra.gmra.mrb[4].mxu1 %vm382_vm12, %v1829_v53 }
 0x5aa   :  { %1900 = vmatpush1.bf16.msra.mxu1 %v1893_v57  ;;  %1931 = vmatprep.mubr.bf16.mxu1 %v2304_v52 }
 0x5ab   :  { %1958 = vmatprep.subr.bf16.mxu1 %v1951_v59 }
 0x5b5   :  { %2146 = vmatmul.mubr.msk.bf16.vlgmr.msra.gmra.mrb[4].mxu1 %vm382_vm12, %v1888_v56 }
 0x5b6   :  { %1959 = vmatpush1.bf16.msra.mxu1 %v1952_v61  ;;  %1990 = vmatprep.mubr.bf16.mxu1 %v2304_v52 }
 0x5b7   :  { %2022 = vmatprep.subr.bf16.mxu1 %v2015_v62 }
 0x5c1   :  { %2147 = vmatmul.mubr.msk.bf16.vlgmr.msra.gmra.mrb[4].mxu1 %vm382_vm12, %v1947_v60 }
 0x5c2   :  { %2023 = vmatpush1.bf16.msra.mxu1 %v2016_v1  ;;  %2054 = vmatprep.mubr.bf16.mxu1 %v2304_v52 }
 0x5cd   :  { %2151 = vmatmul.mubr.msk.bf16.vlgmr.msra.gmra.mrb[4].mxu1 %vm382_vm12, %v2303_v2 }
 0x6a0   :  { %v2056_v4 = vpop.f32.mrb[4].mxu1 }
 0x6a1   :  { %v2081_v8 = vadd.f32 %v2074_v3, %v2056_v4  ;;  %v2058_v9 = vpop.f32.mrb[5].mxu1 }
 0x6a2   :  { %v2082_v10 = vadd.f32 %v2074_v3, %v2058_v9  ;;  %v2060_v11 = vpop.f32.mrb[6].mxu1 }
 0x6a3   :  { %2085 = vst [vmem:[%s2735_s4] sm:$0xff] %v2081_v8  ;;  %v2083_v12 = vadd.f32 %v2079_v7, %v2060_v11  ;;  %v2062_v13 = vpop.f32.mrb[7].mxu1 }
 0x6a4   :  { %2086 = vst.msk [vmem:[%s2735_s4 + $0x8] sm:$0xff] %vm22_vm6, %v2082_v10  ;;  %v2084_v14 = vadd.f32 %v2079_v7, %v2062_v13 }
 0x6a5   :  { %2087 = vst [vmem:[%s2735_s4 + $0x10] sm:$0xff] %v2083_v12 }
 0x6a6   :  { %2088 = vst.msk [vmem:[%s2735_s4 + $0x18] sm:$0xff] %vm22_vm6, %v2084_v14 }

</bundles_post_ra>
